<compile_context>
chip_gen: v7x
topology: tpu7x:2x2x1
jax: 0.10.0
libtpu: 0.0.40
codegen_flags: <defaults>
</compile_context>

<pallas_src>
import jax
import jax.numpy as jnp
from jax import lax
from jax.experimental import pallas as pl
from jax.experimental.pallas import tpu as pltpu

# ----------------------------- model config ---------------------------------
VOCAB_SIZE = 16
HIDDEN_SIZE = 32          # 4*H = 128 -> gate matmul results are exactly lane-dense
NUM_LAYERS = 2
BATCH = 2
SEQ = 8


# --------------------------- fused forward kernel ----------------------------
def _make_fused_kernel(T, B, H, V, L):
    """Build the fused embedding + L-layer LSTM + FC kernel."""

    def kernel(*refs):
        # refs = tok, emb, (wx_l, wh_l, b_l) * L, fc_w, fc_b,
        #        logits_out (T*B, V), hN_out (L,B,H), cN_out (L,B,H)
        tok_ref, emb_ref = refs[0], refs[1]
        layer_refs = refs[2:2 + 3 * L]
        fcw_ref, fcb_ref = refs[2 + 3 * L], refs[3 + 3 * L]
        logits_ref, hN_ref, cN_ref = refs[4 + 3 * L:]

        # ---- embedding lookup as a single MXU matmul (one-hot @ table) ----
        tok = tok_ref[...]                                      # (T*B, 1) int32
        lanes = lax.broadcasted_iota(jnp.int32, (T * B, V), 1)  # (T*B, V)
        onehot = (tok == lanes).astype(jnp.float32)
        x = jnp.dot(onehot, emb_ref[...],
                    preferred_element_type=jnp.float32)         # (T*B, H), rows t*B+b

        layer_in = x
        seq = None
        for l in range(L):
            wx = layer_refs[3 * l + 0][...]   # (H_in, 4H)  gate order i,f,o,g
            wh = layer_refs[3 * l + 1][...]   # (H,    4H)
            b = layer_refs[3 * l + 2][...]    # (1,    4H)  b_ih + b_hh

            # Hoisted input projection + bias: ONE matmul over ALL timesteps,
            # independent of the recurrence -> off the serial critical path.
            xp = jnp.dot(layer_in, wx,
                         preferred_element_type=jnp.float32) + b     # (T*B, 4H)

            h = jnp.zeros((B, H), jnp.float32)                  # hidden=None -> zeros
            c = jnp.zeros((B, H), jnp.float32)
            hs = []
            for t in range(T):                                  # fully unrolled (T static)
                r = t * B
                # ONE lane-dense (B, H) @ (H, 4H) matmul per step
                gates = xp[r:r + B, :] + jnp.dot(
                    h, wh, preferred_element_type=jnp.float32)  # (B, 4H)
                # two EUP pushes: sigmoid on contiguous i|f|o, tanh on g
                ifo = jax.nn.sigmoid(gates[:, :3 * H])          # (B, 3H)
                g_t = jnp.tanh(gates[:, 3 * H:])                # (B, H)
                i_t = ifo[:, 0 * H:1 * H]
                f_t = ifo[:, 1 * H:2 * H]
                o_t = ifo[:, 2 * H:3 * H]
                c = f_t * c + i_t * g_t
                h = o_t * jnp.tanh(c)
                hs.append(h)                                    # stays in vregs

            hN_ref[l] = h
            cN_ref[l] = c
            seq = jnp.concatenate(hs, axis=0)                   # (T*B, H), time-major
            layer_in = seq

        # ---- fused FC head: one matmul, time-major (T*B, V) output ----
        logits_ref[...] = jnp.dot(seq, fcw_ref[...],
                                  preferred_element_type=jnp.float32) + fcb_ref[...]

    return kernel


# ------------------------------ parameters -----------------------------------
def init_params(key, vocab_size, hidden_size, num_layers):
    k_emb, k_lstm, k_fc = jax.random.split(key, 3)
    H = hidden_size
    params = {"emb": jax.random.normal(k_emb, (vocab_size, H), jnp.float32)}

    # nn.LSTM init: uniform(-1/sqrt(H), 1/sqrt(H)); PyTorch gate order i,f,g,o.
    # We re-pack to (i, f, o, g) so the kernel can sigmoid a contiguous i|f|o
    # block; semantics are unchanged (the kernel slices consistently).
    bound = 1.0 / (H ** 0.5)
    order = (0, 1, 3, 2)   # i, f, o, g taken from PyTorch's i,f,g,o layout
    layers = []
    lkeys = jax.random.split(k_lstm, num_layers)
    for l in range(num_layers):
        k1, k2, k3, k4 = jax.random.split(lkeys[l], 4)
        in_size = H  # input_size == hidden_size for every layer here
        w_ih = jax.random.uniform(k1, (4 * H, in_size), jnp.float32, -bound, bound)
        w_hh = jax.random.uniform(k2, (4 * H, H), jnp.float32, -bound, bound)
        b_ih = jax.random.uniform(k3, (4 * H,), jnp.float32, -bound, bound)
        b_hh = jax.random.uniform(k4, (4 * H,), jnp.float32, -bound, bound)
        b_sum = b_ih + b_hh
        # concatenate gates along the OUTPUT axis (lane axis): (H_in, 4H)
        wx = jnp.concatenate([w_ih[g * H:(g + 1) * H, :].T for g in order], axis=1)
        wh = jnp.concatenate([w_hh[g * H:(g + 1) * H, :].T for g in order], axis=1)
        b = jnp.concatenate([b_sum[g * H:(g + 1) * H] for g in order]).reshape(1, 4 * H)
        layers.append({"wx": wx, "wh": wh, "b": b})
    params["layers"] = layers

    # nn.Linear(hidden, vocab)
    k5, k6 = jax.random.split(k_fc)
    w_fc = jax.random.uniform(k5, (vocab_size, H), jnp.float32, -bound, bound)
    b_fc = jax.random.uniform(k6, (vocab_size,), jnp.float32, -bound, bound)
    params["fc_w"] = w_fc.T                 # (H, V)
    params["fc_b"] = b_fc[None, :]          # (1, V)
    return params


# ------------------------------ forward pass ----------------------------------
@jax.jit
def lstm_model_forward(params, x_tokens):
    """x_tokens: int32 (B, T). Returns (logits (B, T, V), (h_n, c_n))."""
    B, T = x_tokens.shape
    V, H = params["emb"].shape
    L = len(params["layers"])

    # time-major token column: row index = t*B + b (matches kernel layout)
    tok_tm = x_tokens.T.reshape(T * B, 1).astype(jnp.int32)

    weights = [params["emb"]]
    for layer in params["layers"]:
        weights += [layer["wx"], layer["wh"], layer["b"]]
    weights += [params["fc_w"], params["fc_b"]]

    flops = (2 * T * B * V * H                      # embedding one-hot matmul
             + L * (2 * (T * B) * H * (4 * H)       # x-projection per layer
                    + 2 * T * B * H * (4 * H))      # h-projection per step
             + 2 * T * B * H * V)                   # fc head
    transcendentals = 5 * T * B * H * L             # 3 sigmoid + 2 tanh per element
    bytes_accessed = 4 * (tok_tm.size + sum(int(w.size) for w in weights)
                          + T * B * V + 2 * L * B * H)

    vmem = pl.BlockSpec(memory_space=pltpu.MemorySpace.VMEM)
    kernel = _make_fused_kernel(T, B, H, V, L)
    out_shape = (jax.ShapeDtypeStruct((T * B, V), jnp.float32),   # time-major logits
                 jax.ShapeDtypeStruct((L, B, H), jnp.float32),
                 jax.ShapeDtypeStruct((L, B, H), jnp.float32))

    logits_tm, h_n, c_n = pl.pallas_call(
        kernel,
        out_shape=out_shape,
        in_specs=[vmem] * (1 + len(weights)),
        out_specs=(vmem, vmem, vmem),
        cost_estimate=pl.CostEstimate(flops=flops,
                                      transcendentals=transcendentals,
                                      bytes_accessed=bytes_accessed),
    )(tok_tm, *weights)

    # wrapper-side layout plumbing: (T*B, V) time-major -> (B, T, V)
    logits = logits_tm.reshape(T, B, V).transpose(1, 0, 2)
    return logits, (h_n, c_n)


# ---------------------------------- main --------------------------------------
if __name__ == "__main__":
    key = jax.random.PRNGKey(0)
    k_params, k_data = jax.random.split(key)

    params = init_params(k_params, VOCAB_SIZE, HIDDEN_SIZE, NUM_LAYERS)
    x = jax.random.randint(k_data, (BATCH, SEQ), 0, VOCAB_SIZE, jnp.int32)

    logits, (h_n, c_n) = lstm_model_forward(params, x)
    jax.block_until_ready((logits, h_n, c_n))

    assert logits.shape == (BATCH, SEQ, VOCAB_SIZE)
    assert h_n.shape == (NUM_LAYERS, BATCH, HIDDEN_SIZE)
    assert c_n.shape == (NUM_LAYERS, BATCH, HIDDEN_SIZE)
    print("KERNEL_OK")
</pallas_src>

<mosaic_0001>
module attributes {stable_mosaic.version = 11 : i64} {
  func.func @kernel(%arg0: memref<16x1xi32, #tpu.memory_space<vmem>>, %arg1: memref<16x32xf32, #tpu.memory_space<vmem>>, %arg2: memref<32x128xf32, #tpu.memory_space<vmem>>, %arg3: memref<32x128xf32, #tpu.memory_space<vmem>>, %arg4: memref<1x128xf32, #tpu.memory_space<vmem>>, %arg5: memref<32x128xf32, #tpu.memory_space<vmem>>, %arg6: memref<32x128xf32, #tpu.memory_space<vmem>>, %arg7: memref<1x128xf32, #tpu.memory_space<vmem>>, %arg8: memref<32x16xf32, #tpu.memory_space<vmem>>, %arg9: memref<1x16xf32, #tpu.memory_space<vmem>>, %arg10: memref<16x16xf32, #tpu.memory_space<vmem>>, %arg11: memref<2x2x32xf32, #tpu.memory_space<vmem>>, %arg12: memref<2x2x32xf32, #tpu.memory_space<vmem>>) attributes {dimension_semantics = [], scalar_prefetch = 0 : i64, scratch_operands = 0 : i64, tpu.core_type = #tpu.core_type<tc>} {
    %c0 = arith.constant 0 : index
    %c0_0 = arith.constant 0 : index
    %0 = vector.load %arg0[%c0, %c0_0] : memref<16x1xi32, #tpu.memory_space<vmem>>, vector<16x1xi32>
    %1 = tpu.iota {dimensions = array<i32: 1>} : vector<16x16xi32>
    %2 = vector.broadcast %0 : vector<16x1xi32> to vector<16x16xi32>
    %3 = arith.cmpi eq, %2, %1 : vector<16x16xi32>
    %4 = arith.extui %3 : vector<16x16xi1> to vector<16x16xi32>
    %5 = arith.sitofp %4 : vector<16x16xi32> to vector<16x16xf32>
    %c0_1 = arith.constant 0 : index
    %c0_2 = arith.constant 0 : index
    %6 = vector.load %arg1[%c0_1, %c0_2] : memref<16x32xf32, #tpu.memory_space<vmem>>, vector<16x32xf32>
    %cst = arith.constant dense<0.000000e+00> : vector<16x32xf32>
    %7 = tpu.matmul %5, %6, %cst {dimension_numbers = #tpu.dot_dimension_numbers<[1], [0], [0], [1], [0, 0, 1, 1], [], []>} : vector<16x16xf32>, vector<16x32xf32>, vector<16x32xf32> -> vector<16x32xf32>
    %c0_3 = arith.constant 0 : index
    %c0_4 = arith.constant 0 : index
    %8 = vector.load %arg2[%c0_3, %c0_4] : memref<32x128xf32, #tpu.memory_space<vmem>>, vector<32x128xf32>
    %c0_5 = arith.constant 0 : index
    %c0_6 = arith.constant 0 : index
    %9 = vector.load %arg3[%c0_5, %c0_6] : memref<32x128xf32, #tpu.memory_space<vmem>>, vector<32x128xf32>
    %c0_7 = arith.constant 0 : index
    %c0_8 = arith.constant 0 : index
    %10 = vector.load %arg4[%c0_7, %c0_8] : memref<1x128xf32, #tpu.memory_space<vmem>>, vector<1x128xf32>
    %cst_9 = arith.constant dense<0.000000e+00> : vector<16x128xf32>
    %11 = tpu.matmul %7, %8, %cst_9 {dimension_numbers = #tpu.dot_dimension_numbers<[1], [0], [0], [1], [0, 0, 1, 1], [], []>} : vector<16x32xf32>, vector<32x128xf32>, vector<16x128xf32> -> vector<16x128xf32>
    %12 = vector.broadcast %10 : vector<1x128xf32> to vector<16x128xf32>
    %13 = arith.addf %11, %12 : vector<16x128xf32>
    %cst_10 = arith.constant 0.000000e+00 : f32
    %14 = vector.broadcast %cst_10 : f32 to vector<2x32xf32>
    %cst_11 = arith.constant 0.000000e+00 : f32
    %15 = vector.broadcast %cst_11 : f32 to vector<2x32xf32>
    %16 = vector.extract_strided_slice %13 {offsets = [0, 0], sizes = [2, 128], strides = [1, 1]} : vector<16x128xf32> to vector<2x128xf32>
    %cst_12 = arith.constant dense<0.000000e+00> : vector<2x128xf32>
    %17 = tpu.matmul %14, %9, %cst_12 {dimension_numbers = #tpu.dot_dimension_numbers<[1], [0], [0], [1], [0, 0, 1, 1], [], []>} : vector<2x32xf32>, vector<32x128xf32>, vector<2x128xf32> -> vector<2x128xf32>
    %18 = arith.addf %16, %17 : vector<2x128xf32>
    %19 = vector.extract_strided_slice %18 {offsets = [0, 0], sizes = [2, 96], strides = [1, 1]} : vector<2x128xf32> to vector<2x96xf32>
    %20 = arith.negf %19 : vector<2x96xf32>
    %21 = math.exp %20 : vector<2x96xf32>
    %cst_13 = arith.constant 1.000000e+00 : f32
    %22 = vector.broadcast %cst_13 : f32 to vector<2x96xf32>
    %23 = arith.addf %22, %21 : vector<2x96xf32>
    %24 = arith.divf %22, %23 : vector<2x96xf32>
    %25 = vector.extract_strided_slice %18 {offsets = [0, 96], sizes = [2, 32], strides = [1, 1]} : vector<2x128xf32> to vector<2x32xf32>
    %26 = math.tanh %25 : vector<2x32xf32>
    %27 = vector.extract_strided_slice %24 {offsets = [0, 0], sizes = [2, 32], strides = [1, 1]} : vector<2x96xf32> to vector<2x32xf32>
    %28 = vector.extract_strided_slice %24 {offsets = [0, 32], sizes = [2, 32], strides = [1, 1]} : vector<2x96xf32> to vector<2x32xf32>
    %29 = vector.extract_strided_slice %24 {offsets = [0, 64], sizes = [2, 32], strides = [1, 1]} : vector<2x96xf32> to vector<2x32xf32>
    %30 = arith.mulf %28, %15 : vector<2x32xf32>
    %31 = arith.mulf %27, %26 : vector<2x32xf32>
    %32 = arith.addf %30, %31 : vector<2x32xf32>
    %33 = math.tanh %32 : vector<2x32xf32>
    %34 = arith.mulf %29, %33 : vector<2x32xf32>
    %35 = vector.extract_strided_slice %13 {offsets = [2, 0], sizes = [2, 128], strides = [1, 1]} : vector<16x128xf32> to vector<2x128xf32>
    %cst_14 = arith.constant dense<0.000000e+00> : vector<2x128xf32>
    %36 = tpu.matmul %34, %9, %cst_14 {dimension_numbers = #tpu.dot_dimension_numbers<[1], [0], [0], [1], [0, 0, 1, 1], [], []>} : vector<2x32xf32>, vector<32x128xf32>, vector<2x128xf32> -> vector<2x128xf32>
    %37 = arith.addf %35, %36 : vector<2x128xf32>
    %38 = vector.extract_strided_slice %37 {offsets = [0, 0], sizes = [2, 96], strides = [1, 1]} : vector<2x128xf32> to vector<2x96xf32>
    %39 = arith.negf %38 : vector<2x96xf32>
    %40 = math.exp %39 : vector<2x96xf32>
    %cst_15 = arith.constant 1.000000e+00 : f32
    %41 = vector.broadcast %cst_15 : f32 to vector<2x96xf32>
    %42 = arith.addf %41, %40 : vector<2x96xf32>
    %43 = arith.divf %41, %42 : vector<2x96xf32>
    %44 = vector.extract_strided_slice %37 {offsets = [0, 96], sizes = [2, 32], strides = [1, 1]} : vector<2x128xf32> to vector<2x32xf32>
    %45 = math.tanh %44 : vector<2x32xf32>
    %46 = vector.extract_strided_slice %43 {offsets = [0, 0], sizes = [2, 32], strides = [1, 1]} : vector<2x96xf32> to vector<2x32xf32>
    %47 = vector.extract_strided_slice %43 {offsets = [0, 32], sizes = [2, 32], strides = [1, 1]} : vector<2x96xf32> to vector<2x32xf32>
    %48 = vector.extract_strided_slice %43 {offsets = [0, 64], sizes = [2, 32], strides = [1, 1]} : vector<2x96xf32> to vector<2x32xf32>
    %49 = arith.mulf %47, %32 : vector<2x32xf32>
    %50 = arith.mulf %46, %45 : vector<2x32xf32>
    %51 = arith.addf %49, %50 : vector<2x32xf32>
    %52 = math.tanh %51 : vector<2x32xf32>
    %53 = arith.mulf %48, %52 : vector<2x32xf32>
    %54 = vector.extract_strided_slice %13 {offsets = [4, 0], sizes = [2, 128], strides = [1, 1]} : vector<16x128xf32> to vector<2x128xf32>
    %cst_16 = arith.constant dense<0.000000e+00> : vector<2x128xf32>
    %55 = tpu.matmul %53, %9, %cst_16 {dimension_numbers = #tpu.dot_dimension_numbers<[1], [0], [0], [1], [0, 0, 1, 1], [], []>} : vector<2x32xf32>, vector<32x128xf32>, vector<2x128xf32> -> vector<2x128xf32>
    %56 = arith.addf %54, %55 : vector<2x128xf32>
    %57 = vector.extract_strided_slice %56 {offsets = [0, 0], sizes = [2, 96], strides = [1, 1]} : vector<2x128xf32> to vector<2x96xf32>
    %58 = arith.negf %57 : vector<2x96xf32>
    %59 = math.exp %58 : vector<2x96xf32>
    %cst_17 = arith.constant 1.000000e+00 : f32
    %60 = vector.broadcast %cst_17 : f32 to vector<2x96xf32>
    %61 = arith.addf %60, %59 : vector<2x96xf32>
    %62 = arith.divf %60, %61 : vector<2x96xf32>
    %63 = vector.extract_strided_slice %56 {offsets = [0, 96], sizes = [2, 32], strides = [1, 1]} : vector<2x128xf32> to vector<2x32xf32>
    %64 = math.tanh %63 : vector<2x32xf32>
    %65 = vector.extract_strided_slice %62 {offsets = [0, 0], sizes = [2, 32], strides = [1, 1]} : vector<2x96xf32> to vector<2x32xf32>
    %66 = vector.extract_strided_slice %62 {offsets = [0, 32], sizes = [2, 32], strides = [1, 1]} : vector<2x96xf32> to vector<2x32xf32>
    %67 = vector.extract_strided_slice %62 {offsets = [0, 64], sizes = [2, 32], strides = [1, 1]} : vector<2x96xf32> to vector<2x32xf32>
    %68 = arith.mulf %66, %51 : vector<2x32xf32>
    %69 = arith.mulf %65, %64 : vector<2x32xf32>
    %70 = arith.addf %68, %69 : vector<2x32xf32>
    %71 = math.tanh %70 : vector<2x32xf32>
    %72 = arith.mulf %67, %71 : vector<2x32xf32>
    %73 = vector.extract_strided_slice %13 {offsets = [6, 0], sizes = [2, 128], strides = [1, 1]} : vector<16x128xf32> to vector<2x128xf32>
    %cst_18 = arith.constant dense<0.000000e+00> : vector<2x128xf32>
    %74 = tpu.matmul %72, %9, %cst_18 {dimension_numbers = #tpu.dot_dimension_numbers<[1], [0], [0], [1], [0, 0, 1, 1], [], []>} : vector<2x32xf32>, vector<32x128xf32>, vector<2x128xf32> -> vector<2x128xf32>
    %75 = arith.addf %73, %74 : vector<2x128xf32>
    %76 = vector.extract_strided_slice %75 {offsets = [0, 0], sizes = [2, 96], strides = [1, 1]} : vector<2x128xf32> to vector<2x96xf32>
    %77 = arith.negf %76 : vector<2x96xf32>
    %78 = math.exp %77 : vector<2x96xf32>
    %cst_19 = arith.constant 1.000000e+00 : f32
    %79 = vector.broadcast %cst_19 : f32 to vector<2x96xf32>
    %80 = arith.addf %79, %78 : vector<2x96xf32>
    %81 = arith.divf %79, %80 : vector<2x96xf32>
    %82 = vector.extract_strided_slice %75 {offsets = [0, 96], sizes = [2, 32], strides = [1, 1]} : vector<2x128xf32> to vector<2x32xf32>
    %83 = math.tanh %82 : vector<2x32xf32>
    %84 = vector.extract_strided_slice %81 {offsets = [0, 0], sizes = [2, 32], strides = [1, 1]} : vector<2x96xf32> to vector<2x32xf32>
    %85 = vector.extract_strided_slice %81 {offsets = [0, 32], sizes = [2, 32], strides = [1, 1]} : vector<2x96xf32> to vector<2x32xf32>
    %86 = vector.extract_strided_slice %81 {offsets = [0, 64], sizes = [2, 32], strides = [1, 1]} : vector<2x96xf32> to vector<2x32xf32>
    %87 = arith.mulf %85, %70 : vector<2x32xf32>
    %88 = arith.mulf %84, %83 : vector<2x32xf32>
    %89 = arith.addf %87, %88 : vector<2x32xf32>
    %90 = math.tanh %89 : vector<2x32xf32>
    %91 = arith.mulf %86, %90 : vector<2x32xf32>
    %92 = vector.extract_strided_slice %13 {offsets = [8, 0], sizes = [2, 128], strides = [1, 1]} : vector<16x128xf32> to vector<2x128xf32>
    %cst_20 = arith.constant dense<0.000000e+00> : vector<2x128xf32>
    %93 = tpu.matmul %91, %9, %cst_20 {dimension_numbers = #tpu.dot_dimension_numbers<[1], [0], [0], [1], [0, 0, 1, 1], [], []>} : vector<2x32xf32>, vector<32x128xf32>, vector<2x128xf32> -> vector<2x128xf32>
    %94 = arith.addf %92, %93 : vector<2x128xf32>
    %95 = vector.extract_strided_slice %94 {offsets = [0, 0], sizes = [2, 96], strides = [1, 1]} : vector<2x128xf32> to vector<2x96xf32>
    %96 = arith.negf %95 : vector<2x96xf32>
    %97 = math.exp %96 : vector<2x96xf32>
    %cst_21 = arith.constant 1.000000e+00 : f32
    %98 = vector.broadcast %cst_21 : f32 to vector<2x96xf32>
    %99 = arith.addf %98, %97 : vector<2x96xf32>
    %100 = arith.divf %98, %99 : vector<2x96xf32>
    %101 = vector.extract_strided_slice %94 {offsets = [0, 96], sizes = [2, 32], strides = [1, 1]} : vector<2x128xf32> to vector<2x32xf32>
    %102 = math.tanh %101 : vector<2x32xf32>
    %103 = vector.extract_strided_slice %100 {offsets = [0, 0], sizes = [2, 32], strides = [1, 1]} : vector<2x96xf32> to vector<2x32xf32>
    %104 = vector.extract_strided_slice %100 {offsets = [0, 32], sizes = [2, 32], strides = [1, 1]} : vector<2x96xf32> to vector<2x32xf32>
    %105 = vector.extract_strided_slice %100 {offsets = [0, 64], sizes = [2, 32], strides = [1, 1]} : vector<2x96xf32> to vector<2x32xf32>
    %106 = arith.mulf %104, %89 : vector<2x32xf32>
    %107 = arith.mulf %103, %102 : vector<2x32xf32>
    %108 = arith.addf %106, %107 : vector<2x32xf32>
    %109 = math.tanh %108 : vector<2x32xf32>
    %110 = arith.mulf %105, %109 : vector<2x32xf32>
    %111 = vector.extract_strided_slice %13 {offsets = [10, 0], sizes = [2, 128], strides = [1, 1]} : vector<16x128xf32> to vector<2x128xf32>
    %cst_22 = arith.constant dense<0.000000e+00> : vector<2x128xf32>
    %112 = tpu.matmul %110, %9, %cst_22 {dimension_numbers = #tpu.dot_dimension_numbers<[1], [0], [0], [1], [0, 0, 1, 1], [], []>} : vector<2x32xf32>, vector<32x128xf32>, vector<2x128xf32> -> vector<2x128xf32>
    %113 = arith.addf %111, %112 : vector<2x128xf32>
    %114 = vector.extract_strided_slice %113 {offsets = [0, 0], sizes = [2, 96], strides = [1, 1]} : vector<2x128xf32> to vector<2x96xf32>
    %115 = arith.negf %114 : vector<2x96xf32>
    %116 = math.exp %115 : vector<2x96xf32>
    %cst_23 = arith.constant 1.000000e+00 : f32
    %117 = vector.broadcast %cst_23 : f32 to vector<2x96xf32>
    %118 = arith.addf %117, %116 : vector<2x96xf32>
    %119 = arith.divf %117, %118 : vector<2x96xf32>
    %120 = vector.extract_strided_slice %113 {offsets = [0, 96], sizes = [2, 32], strides = [1, 1]} : vector<2x128xf32> to vector<2x32xf32>
    %121 = math.tanh %120 : vector<2x32xf32>
    %122 = vector.extract_strided_slice %119 {offsets = [0, 0], sizes = [2, 32], strides = [1, 1]} : vector<2x96xf32> to vector<2x32xf32>
    %123 = vector.extract_strided_slice %119 {offsets = [0, 32], sizes = [2, 32], strides = [1, 1]} : vector<2x96xf32> to vector<2x32xf32>
    %124 = vector.extract_strided_slice %119 {offsets = [0, 64], sizes = [2, 32], strides = [1, 1]} : vector<2x96xf32> to vector<2x32xf32>
    %125 = arith.mulf %123, %108 : vector<2x32xf32>
    %126 = arith.mulf %122, %121 : vector<2x32xf32>
    %127 = arith.addf %125, %126 : vector<2x32xf32>
    %128 = math.tanh %127 : vector<2x32xf32>
    %129 = arith.mulf %124, %128 : vector<2x32xf32>
    %130 = vector.extract_strided_slice %13 {offsets = [12, 0], sizes = [2, 128], strides = [1, 1]} : vector<16x128xf32> to vector<2x128xf32>
    %cst_24 = arith.constant dense<0.000000e+00> : vector<2x128xf32>
    %131 = tpu.matmul %129, %9, %cst_24 {dimension_numbers = #tpu.dot_dimension_numbers<[1], [0], [0], [1], [0, 0, 1, 1], [], []>} : vector<2x32xf32>, vector<32x128xf32>, vector<2x128xf32> -> vector<2x128xf32>
    %132 = arith.addf %130, %131 : vector<2x128xf32>
    %133 = vector.extract_strided_slice %132 {offsets = [0, 0], sizes = [2, 96], strides = [1, 1]} : vector<2x128xf32> to vector<2x96xf32>
    %134 = arith.negf %133 : vector<2x96xf32>
    %135 = math.exp %134 : vector<2x96xf32>
    %cst_25 = arith.constant 1.000000e+00 : f32
    %136 = vector.broadcast %cst_25 : f32 to vector<2x96xf32>
    %137 = arith.addf %136, %135 : vector<2x96xf32>
    %138 = arith.divf %136, %137 : vector<2x96xf32>
    %139 = vector.extract_strided_slice %132 {offsets = [0, 96], sizes = [2, 32], strides = [1, 1]} : vector<2x128xf32> to vector<2x32xf32>
    %140 = math.tanh %139 : vector<2x32xf32>
    %141 = vector.extract_strided_slice %138 {offsets = [0, 0], sizes = [2, 32], strides = [1, 1]} : vector<2x96xf32> to vector<2x32xf32>
    %142 = vector.extract_strided_slice %138 {offsets = [0, 32], sizes = [2, 32], strides = [1, 1]} : vector<2x96xf32> to vector<2x32xf32>
    %143 = vector.extract_strided_slice %138 {offsets = [0, 64], sizes = [2, 32], strides = [1, 1]} : vector<2x96xf32> to vector<2x32xf32>
    %144 = arith.mulf %142, %127 : vector<2x32xf32>
    %145 = arith.mulf %141, %140 : vector<2x32xf32>
    %146 = arith.addf %144, %145 : vector<2x32xf32>
    %147 = math.tanh %146 : vector<2x32xf32>
    %148 = arith.mulf %143, %147 : vector<2x32xf32>
    %149 = vector.extract_strided_slice %13 {offsets = [14, 0], sizes = [2, 128], strides = [1, 1]} : vector<16x128xf32> to vector<2x128xf32>
    %cst_26 = arith.constant dense<0.000000e+00> : vector<2x128xf32>
    %150 = tpu.matmul %148, %9, %cst_26 {dimension_numbers = #tpu.dot_dimension_numbers<[1], [0], [0], [1], [0, 0, 1, 1], [], []>} : vector<2x32xf32>, vector<32x128xf32>, vector<2x128xf32> -> vector<2x128xf32>
    %151 = arith.addf %149, %150 : vector<2x128xf32>
    %152 = vector.extract_strided_slice %151 {offsets = [0, 0], sizes = [2, 96], strides = [1, 1]} : vector<2x128xf32> to vector<2x96xf32>
    %153 = arith.negf %152 : vector<2x96xf32>
    %154 = math.exp %153 : vector<2x96xf32>
    %cst_27 = arith.constant 1.000000e+00 : f32
    %155 = vector.broadcast %cst_27 : f32 to vector<2x96xf32>
    %156 = arith.addf %155, %154 : vector<2x96xf32>
    %157 = arith.divf %155, %156 : vector<2x96xf32>
    %158 = vector.extract_strided_slice %151 {offsets = [0, 96], sizes = [2, 32], strides = [1, 1]} : vector<2x128xf32> to vector<2x32xf32>
    %159 = math.tanh %158 : vector<2x32xf32>
    %160 = vector.extract_strided_slice %157 {offsets = [0, 0], sizes = [2, 32], strides = [1, 1]} : vector<2x96xf32> to vector<2x32xf32>
    %161 = vector.extract_strided_slice %157 {offsets = [0, 32], sizes = [2, 32], strides = [1, 1]} : vector<2x96xf32> to vector<2x32xf32>
    %162 = vector.extract_strided_slice %157 {offsets = [0, 64], sizes = [2, 32], strides = [1, 1]} : vector<2x96xf32> to vector<2x32xf32>
    %163 = arith.mulf %161, %146 : vector<2x32xf32>
    %164 = arith.mulf %160, %159 : vector<2x32xf32>
    %165 = arith.addf %163, %164 : vector<2x32xf32>
    %166 = math.tanh %165 : vector<2x32xf32>
    %167 = arith.mulf %162, %166 : vector<2x32xf32>
    %c0_28 = arith.constant 0 : index
    %c0_29 = arith.constant 0 : index
    %c0_30 = arith.constant 0 : index
    %168 = vector.load %arg11[%c0_28, %c0_29, %c0_30] : memref<2x2x32xf32, #tpu.memory_space<vmem>>, vector<1x2x32xf32>
    %169 = vector.shape_cast %168 : vector<1x2x32xf32> to vector<2x32xf32>
    %170 = vector.shape_cast %167 : vector<2x32xf32> to vector<1x2x32xf32>
    tpu.vector_store %arg11[%c0_28, %c0_29, %c0_30], %170 {strides = array<i32>} : memref<2x2x32xf32, #tpu.memory_space<vmem>>, vector<1x2x32xf32>,
    %c0_31 = arith.constant 0 : index
    %c0_32 = arith.constant 0 : index
    %c0_33 = arith.constant 0 : index
    %171 = vector.load %arg12[%c0_31, %c0_32, %c0_33] : memref<2x2x32xf32, #tpu.memory_space<vmem>>, vector<1x2x32xf32>
    %172 = vector.shape_cast %171 : vector<1x2x32xf32> to vector<2x32xf32>
    %173 = vector.shape_cast %165 : vector<2x32xf32> to vector<1x2x32xf32>
    tpu.vector_store %arg12[%c0_31, %c0_32, %c0_33], %173 {strides = array<i32>} : memref<2x2x32xf32, #tpu.memory_space<vmem>>, vector<1x2x32xf32>,
    %174 = tpu.concatenate %34, %53, %72, %91, %110, %129, %148, %167 in 0 : vector<2x32xf32>, vector<2x32xf32>, vector<2x32xf32>, vector<2x32xf32>, vector<2x32xf32>, vector<2x32xf32>, vector<2x32xf32>, vector<2x32xf32> -> vector<16x32xf32>
    %c0_34 = arith.constant 0 : index
    %c0_35 = arith.constant 0 : index
    %175 = vector.load %arg5[%c0_34, %c0_35] : memref<32x128xf32, #tpu.memory_space<vmem>>, vector<32x128xf32>
    %c0_36 = arith.constant 0 : index
    %c0_37 = arith.constant 0 : index
    %176 = vector.load %arg6[%c0_36, %c0_37] : memref<32x128xf32, #tpu.memory_space<vmem>>, vector<32x128xf32>
    %c0_38 = arith.constant 0 : index
    %c0_39 = arith.constant 0 : index
    %177 = vector.load %arg7[%c0_38, %c0_39] : memref<1x128xf32, #tpu.memory_space<vmem>>, vector<1x128xf32>
    %cst_40 = arith.constant dense<0.000000e+00> : vector<16x128xf32>
    %178 = tpu.matmul %174, %175, %cst_40 {dimension_numbers = #tpu.dot_dimension_numbers<[1], [0], [0], [1], [0, 0, 1, 1], [], []>} : vector<16x32xf32>, vector<32x128xf32>, vector<16x128xf32> -> vector<16x128xf32>
    %179 = vector.broadcast %177 : vector<1x128xf32> to vector<16x128xf32>
    %180 = arith.addf %178, %179 : vector<16x128xf32>
    %cst_41 = arith.constant 0.000000e+00 : f32
    %181 = vector.broadcast %cst_41 : f32 to vector<2x32xf32>
    %cst_42 = arith.constant 0.000000e+00 : f32
    %182 = vector.broadcast %cst_42 : f32 to vector<2x32xf32>
    %183 = vector.extract_strided_slice %180 {offsets = [0, 0], sizes = [2, 128], strides = [1, 1]} : vector<16x128xf32> to vector<2x128xf32>
    %cst_43 = arith.constant dense<0.000000e+00> : vector<2x128xf32>
    %184 = tpu.matmul %181, %176, %cst_43 {dimension_numbers = #tpu.dot_dimension_numbers<[1], [0], [0], [1], [0, 0, 1, 1], [], []>} : vector<2x32xf32>, vector<32x128xf32>, vector<2x128xf32> -> vector<2x128xf32>
    %185 = arith.addf %183, %184 : vector<2x128xf32>
    %186 = vector.extract_strided_slice %185 {offsets = [0, 0], sizes = [2, 96], strides = [1, 1]} : vector<2x128xf32> to vector<2x96xf32>
    %187 = arith.negf %186 : vector<2x96xf32>
    %188 = math.exp %187 : vector<2x96xf32>
    %cst_44 = arith.constant 1.000000e+00 : f32
    %189 = vector.broadcast %cst_44 : f32 to vector<2x96xf32>
    %190 = arith.addf %189, %188 : vector<2x96xf32>
    %191 = arith.divf %189, %190 : vector<2x96xf32>
    %192 = vector.extract_strided_slice %185 {offsets = [0, 96], sizes = [2, 32], strides = [1, 1]} : vector<2x128xf32> to vector<2x32xf32>
    %193 = math.tanh %192 : vector<2x32xf32>
    %194 = vector.extract_strided_slice %191 {offsets = [0, 0], sizes = [2, 32], strides = [1, 1]} : vector<2x96xf32> to vector<2x32xf32>
    %195 = vector.extract_strided_slice %191 {offsets = [0, 32], sizes = [2, 32], strides = [1, 1]} : vector<2x96xf32> to vector<2x32xf32>
    %196 = vector.extract_strided_slice %191 {offsets = [0, 64], sizes = [2, 32], strides = [1, 1]} : vector<2x96xf32> to vector<2x32xf32>
    %197 = arith.mulf %195, %182 : vector<2x32xf32>
    %198 = arith.mulf %194, %193 : vector<2x32xf32>
    %199 = arith.addf %197, %198 : vector<2x32xf32>
    %200 = math.tanh %199 : vector<2x32xf32>
    %201 = arith.mulf %196, %200 : vector<2x32xf32>
    %202 = vector.extract_strided_slice %180 {offsets = [2, 0], sizes = [2, 128], strides = [1, 1]} : vector<16x128xf32> to vector<2x128xf32>
    %cst_45 = arith.constant dense<0.000000e+00> : vector<2x128xf32>
    %203 = tpu.matmul %201, %176, %cst_45 {dimension_numbers = #tpu.dot_dimension_numbers<[1], [0], [0], [1], [0, 0, 1, 1], [], []>} : vector<2x32xf32>, vector<32x128xf32>, vector<2x128xf32> -> vector<2x128xf32>
    %204 = arith.addf %202, %203 : vector<2x128xf32>
    %205 = vector.extract_strided_slice %204 {offsets = [0, 0], sizes = [2, 96], strides = [1, 1]} : vector<2x128xf32> to vector<2x96xf32>
    %206 = arith.negf %205 : vector<2x96xf32>
    %207 = math.exp %206 : vector<2x96xf32>
    %cst_46 = arith.constant 1.000000e+00 : f32
    %208 = vector.broadcast %cst_46 : f32 to vector<2x96xf32>
    %209 = arith.addf %208, %207 : vector<2x96xf32>
    %210 = arith.divf %208, %209 : vector<2x96xf32>
    %211 = vector.extract_strided_slice %204 {offsets = [0, 96], sizes = [2, 32], strides = [1, 1]} : vector<2x128xf32> to vector<2x32xf32>
    %212 = math.tanh %211 : vector<2x32xf32>
    %213 = vector.extract_strided_slice %210 {offsets = [0, 0], sizes = [2, 32], strides = [1, 1]} : vector<2x96xf32> to vector<2x32xf32>
    %214 = vector.extract_strided_slice %210 {offsets = [0, 32], sizes = [2, 32], strides = [1, 1]} : vector<2x96xf32> to vector<2x32xf32>
    %215 = vector.extract_strided_slice %210 {offsets = [0, 64], sizes = [2, 32], strides = [1, 1]} : vector<2x96xf32> to vector<2x32xf32>
    %216 = arith.mulf %214, %199 : vector<2x32xf32>
    %217 = arith.mulf %213, %212 : vector<2x32xf32>
    %218 = arith.addf %216, %217 : vector<2x32xf32>
    %219 = math.tanh %218 : vector<2x32xf32>
    %220 = arith.mulf %215, %219 : vector<2x32xf32>
    %221 = vector.extract_strided_slice %180 {offsets = [4, 0], sizes = [2, 128], strides = [1, 1]} : vector<16x128xf32> to vector<2x128xf32>
    %cst_47 = arith.constant dense<0.000000e+00> : vector<2x128xf32>
    %222 = tpu.matmul %220, %176, %cst_47 {dimension_numbers = #tpu.dot_dimension_numbers<[1], [0], [0], [1], [0, 0, 1, 1], [], []>} : vector<2x32xf32>, vector<32x128xf32>, vector<2x128xf32> -> vector<2x128xf32>
    %223 = arith.addf %221, %222 : vector<2x128xf32>
    %224 = vector.extract_strided_slice %223 {offsets = [0, 0], sizes = [2, 96], strides = [1, 1]} : vector<2x128xf32> to vector<2x96xf32>
    %225 = arith.negf %224 : vector<2x96xf32>
    %226 = math.exp %225 : vector<2x96xf32>
    %cst_48 = arith.constant 1.000000e+00 : f32
    %227 = vector.broadcast %cst_48 : f32 to vector<2x96xf32>
    %228 = arith.addf %227, %226 : vector<2x96xf32>
    %229 = arith.divf %227, %228 : vector<2x96xf32>
    %230 = vector.extract_strided_slice %223 {offsets = [0, 96], sizes = [2, 32], strides = [1, 1]} : vector<2x128xf32> to vector<2x32xf32>
    %231 = math.tanh %230 : vector<2x32xf32>
    %232 = vector.extract_strided_slice %229 {offsets = [0, 0], sizes = [2, 32], strides = [1, 1]} : vector<2x96xf32> to vector<2x32xf32>
    %233 = vector.extract_strided_slice %229 {offsets = [0, 32], sizes = [2, 32], strides = [1, 1]} : vector<2x96xf32> to vector<2x32xf32>
    %234 = vector.extract_strided_slice %229 {offsets = [0, 64], sizes = [2, 32], strides = [1, 1]} : vector<2x96xf32> to vector<2x32xf32>
    %235 = arith.mulf %233, %218 : vector<2x32xf32>
    %236 = arith.mulf %232, %231 : vector<2x32xf32>
    %237 = arith.addf %235, %236 : vector<2x32xf32>
    %238 = math.tanh %237 : vector<2x32xf32>
    %239 = arith.mulf %234, %238 : vector<2x32xf32>
    %240 = vector.extract_strided_slice %180 {offsets = [6, 0], sizes = [2, 128], strides = [1, 1]} : vector<16x128xf32> to vector<2x128xf32>
    %cst_49 = arith.constant dense<0.000000e+00> : vector<2x128xf32>
    %241 = tpu.matmul %239, %176, %cst_49 {dimension_numbers = #tpu.dot_dimension_numbers<[1], [0], [0], [1], [0, 0, 1, 1], [], []>} : vector<2x32xf32>, vector<32x128xf32>, vector<2x128xf32> -> vector<2x128xf32>
    %242 = arith.addf %240, %241 : vector<2x128xf32>
    %243 = vector.extract_strided_slice %242 {offsets = [0, 0], sizes = [2, 96], strides = [1, 1]} : vector<2x128xf32> to vector<2x96xf32>
    %244 = arith.negf %243 : vector<2x96xf32>
    %245 = math.exp %244 : vector<2x96xf32>
    %cst_50 = arith.constant 1.000000e+00 : f32
    %246 = vector.broadcast %cst_50 : f32 to vector<2x96xf32>
    %247 = arith.addf %246, %245 : vector<2x96xf32>
    %248 = arith.divf %246, %247 : vector<2x96xf32>
    %249 = vector.extract_strided_slice %242 {offsets = [0, 96], sizes = [2, 32], strides = [1, 1]} : vector<2x128xf32> to vector<2x32xf32>
    %250 = math.tanh %249 : vector<2x32xf32>
    %251 = vector.extract_strided_slice %248 {offsets = [0, 0], sizes = [2, 32], strides = [1, 1]} : vector<2x96xf32> to vector<2x32xf32>
    %252 = vector.extract_strided_slice %248 {offsets = [0, 32], sizes = [2, 32], strides = [1, 1]} : vector<2x96xf32> to vector<2x32xf32>
    %253 = vector.extract_strided_slice %248 {offsets = [0, 64], sizes = [2, 32], strides = [1, 1]} : vector<2x96xf32> to vector<2x32xf32>
    %254 = arith.mulf %252, %237 : vector<2x32xf32>
    %255 = arith.mulf %251, %250 : vector<2x32xf32>
    %256 = arith.addf %254, %255 : vector<2x32xf32>
    %257 = math.tanh %256 : vector<2x32xf32>
    %258 = arith.mulf %253, %257 : vector<2x32xf32>
    %259 = vector.extract_strided_slice %180 {offsets = [8, 0], sizes = [2, 128], strides = [1, 1]} : vector<16x128xf32> to vector<2x128xf32>
    %cst_51 = arith.constant dense<0.000000e+00> : vector<2x128xf32>
    %260 = tpu.matmul %258, %176, %cst_51 {dimension_numbers = #tpu.dot_dimension_numbers<[1], [0], [0], [1], [0, 0, 1, 1], [], []>} : vector<2x32xf32>, vector<32x128xf32>, vector<2x128xf32> -> vector<2x128xf32>
    %261 = arith.addf %259, %260 : vector<2x128xf32>
    %262 = vector.extract_strided_slice %261 {offsets = [0, 0], sizes = [2, 96], strides = [1, 1]} : vector<2x128xf32> to vector<2x96xf32>
    %263 = arith.negf %262 : vector<2x96xf32>
    %264 = math.exp %263 : vector<2x96xf32>
    %cst_52 = arith.constant 1.000000e+00 : f32
    %265 = vector.broadcast %cst_52 : f32 to vector<2x96xf32>
    %266 = arith.addf %265, %264 : vector<2x96xf32>
    %267 = arith.divf %265, %266 : vector<2x96xf32>
    %268 = vector.extract_strided_slice %261 {offsets = [0, 96], sizes = [2, 32], strides = [1, 1]} : vector<2x128xf32> to vector<2x32xf32>
    %269 = math.tanh %268 : vector<2x32xf32>
    %270 = vector.extract_strided_slice %267 {offsets = [0, 0], sizes = [2, 32], strides = [1, 1]} : vector<2x96xf32> to vector<2x32xf32>
    %271 = vector.extract_strided_slice %267 {offsets = [0, 32], sizes = [2, 32], strides = [1, 1]} : vector<2x96xf32> to vector<2x32xf32>
    %272 = vector.extract_strided_slice %267 {offsets = [0, 64], sizes = [2, 32], strides = [1, 1]} : vector<2x96xf32> to vector<2x32xf32>
    %273 = arith.mulf %271, %256 : vector<2x32xf32>
    %274 = arith.mulf %270, %269 : vector<2x32xf32>
    %275 = arith.addf %273, %274 : vector<2x32xf32>
    %276 = math.tanh %275 : vector<2x32xf32>
    %277 = arith.mulf %272, %276 : vector<2x32xf32>
    %278 = vector.extract_strided_slice %180 {offsets = [10, 0], sizes = [2, 128], strides = [1, 1]} : vector<16x128xf32> to vector<2x128xf32>
    %cst_53 = arith.constant dense<0.000000e+00> : vector<2x128xf32>
    %279 = tpu.matmul %277, %176, %cst_53 {dimension_numbers = #tpu.dot_dimension_numbers<[1], [0], [0], [1], [0, 0, 1, 1], [], []>} : vector<2x32xf32>, vector<32x128xf32>, vector<2x128xf32> -> vector<2x128xf32>
    %280 = arith.addf %278, %279 : vector<2x128xf32>
    %281 = vector.extract_strided_slice %280 {offsets = [0, 0], sizes = [2, 96], strides = [1, 1]} : vector<2x128xf32> to vector<2x96xf32>
    %282 = arith.negf %281 : vector<2x96xf32>
    %283 = math.exp %282 : vector<2x96xf32>
    %cst_54 = arith.constant 1.000000e+00 : f32
    %284 = vector.broadcast %cst_54 : f32 to vector<2x96xf32>
    %285 = arith.addf %284, %283 : vector<2x96xf32>
    %286 = arith.divf %284, %285 : vector<2x96xf32>
    %287 = vector.extract_strided_slice %280 {offsets = [0, 96], sizes = [2, 32], strides = [1, 1]} : vector<2x128xf32> to vector<2x32xf32>
    %288 = math.tanh %287 : vector<2x32xf32>
    %289 = vector.extract_strided_slice %286 {offsets = [0, 0], sizes = [2, 32], strides = [1, 1]} : vector<2x96xf32> to vector<2x32xf32>
    %290 = vector.extract_strided_slice %286 {offsets = [0, 32], sizes = [2, 32], strides = [1, 1]} : vector<2x96xf32> to vector<2x32xf32>
    %291 = vector.extract_strided_slice %286 {offsets = [0, 64], sizes = [2, 32], strides = [1, 1]} : vector<2x96xf32> to vector<2x32xf32>
    %292 = arith.mulf %290, %275 : vector<2x32xf32>
    %293 = arith.mulf %289, %288 : vector<2x32xf32>
    %294 = arith.addf %292, %293 : vector<2x32xf32>
    %295 = math.tanh %294 : vector<2x32xf32>
    %296 = arith.mulf %291, %295 : vector<2x32xf32>
    %297 = vector.extract_strided_slice %180 {offsets = [12, 0], sizes = [2, 128], strides = [1, 1]} : vector<16x128xf32> to vector<2x128xf32>
    %cst_55 = arith.constant dense<0.000000e+00> : vector<2x128xf32>
    %298 = tpu.matmul %296, %176, %cst_55 {dimension_numbers = #tpu.dot_dimension_numbers<[1], [0], [0], [1], [0, 0, 1, 1], [], []>} : vector<2x32xf32>, vector<32x128xf32>, vector<2x128xf32> -> vector<2x128xf32>
    %299 = arith.addf %297, %298 : vector<2x128xf32>
    %300 = vector.extract_strided_slice %299 {offsets = [0, 0], sizes = [2, 96], strides = [1, 1]} : vector<2x128xf32> to vector<2x96xf32>
    %301 = arith.negf %300 : vector<2x96xf32>
    %302 = math.exp %301 : vector<2x96xf32>
    %cst_56 = arith.constant 1.000000e+00 : f32
    %303 = vector.broadcast %cst_56 : f32 to vector<2x96xf32>
    %304 = arith.addf %303, %302 : vector<2x96xf32>
    %305 = arith.divf %303, %304 : vector<2x96xf32>
    %306 = vector.extract_strided_slice %299 {offsets = [0, 96], sizes = [2, 32], strides = [1, 1]} : vector<2x128xf32> to vector<2x32xf32>
    %307 = math.tanh %306 : vector<2x32xf32>
    %308 = vector.extract_strided_slice %305 {offsets = [0, 0], sizes = [2, 32], strides = [1, 1]} : vector<2x96xf32> to vector<2x32xf32>
    %309 = vector.extract_strided_slice %305 {offsets = [0, 32], sizes = [2, 32], strides = [1, 1]} : vector<2x96xf32> to vector<2x32xf32>
    %310 = vector.extract_strided_slice %305 {offsets = [0, 64], sizes = [2, 32], strides = [1, 1]} : vector<2x96xf32> to vector<2x32xf32>
    %311 = arith.mulf %309, %294 : vector<2x32xf32>
    %312 = arith.mulf %308, %307 : vector<2x32xf32>
    %313 = arith.addf %311, %312 : vector<2x32xf32>
    %314 = math.tanh %313 : vector<2x32xf32>
    %315 = arith.mulf %310, %314 : vector<2x32xf32>
    %316 = vector.extract_strided_slice %180 {offsets = [14, 0], sizes = [2, 128], strides = [1, 1]} : vector<16x128xf32> to vector<2x128xf32>
    %cst_57 = arith.constant dense<0.000000e+00> : vector<2x128xf32>
    %317 = tpu.matmul %315, %176, %cst_57 {dimension_numbers = #tpu.dot_dimension_numbers<[1], [0], [0], [1], [0, 0, 1, 1], [], []>} : vector<2x32xf32>, vector<32x128xf32>, vector<2x128xf32> -> vector<2x128xf32>
    %318 = arith.addf %316, %317 : vector<2x128xf32>
    %319 = vector.extract_strided_slice %318 {offsets = [0, 0], sizes = [2, 96], strides = [1, 1]} : vector<2x128xf32> to vector<2x96xf32>
    %320 = arith.negf %319 : vector<2x96xf32>
    %321 = math.exp %320 : vector<2x96xf32>
    %cst_58 = arith.constant 1.000000e+00 : f32
    %322 = vector.broadcast %cst_58 : f32 to vector<2x96xf32>
    %323 = arith.addf %322, %321 : vector<2x96xf32>
    %324 = arith.divf %322, %323 : vector<2x96xf32>
    %325 = vector.extract_strided_slice %318 {offsets = [0, 96], sizes = [2, 32], strides = [1, 1]} : vector<2x128xf32> to vector<2x32xf32>
    %326 = math.tanh %325 : vector<2x32xf32>
    %327 = vector.extract_strided_slice %324 {offsets = [0, 0], sizes = [2, 32], strides = [1, 1]} : vector<2x96xf32> to vector<2x32xf32>
    %328 = vector.extract_strided_slice %324 {offsets = [0, 32], sizes = [2, 32], strides = [1, 1]} : vector<2x96xf32> to vector<2x32xf32>
    %329 = vector.extract_strided_slice %324 {offsets = [0, 64], sizes = [2, 32], strides = [1, 1]} : vector<2x96xf32> to vector<2x32xf32>
    %330 = arith.mulf %328, %313 : vector<2x32xf32>
    %331 = arith.mulf %327, %326 : vector<2x32xf32>
    %332 = arith.addf %330, %331 : vector<2x32xf32>
    %333 = math.tanh %332 : vector<2x32xf32>
    %334 = arith.mulf %329, %333 : vector<2x32xf32>
    %c1 = arith.constant 1 : index
    %c0_59 = arith.constant 0 : index
    %c0_60 = arith.constant 0 : index
    %335 = vector.load %arg11[%c1, %c0_59, %c0_60] : memref<2x2x32xf32, #tpu.memory_space<vmem>>, vector<1x2x32xf32>
    %336 = vector.shape_cast %335 : vector<1x2x32xf32> to vector<2x32xf32>
    %337 = vector.shape_cast %334 : vector<2x32xf32> to vector<1x2x32xf32>
    tpu.vector_store %arg11[%c1, %c0_59, %c0_60], %337 {strides = array<i32>} : memref<2x2x32xf32, #tpu.memory_space<vmem>>, vector<1x2x32xf32>,
    %c1_61 = arith.constant 1 : index
    %c0_62 = arith.constant 0 : index
    %c0_63 = arith.constant 0 : index
    %338 = vector.load %arg12[%c1_61, %c0_62, %c0_63] : memref<2x2x32xf32, #tpu.memory_space<vmem>>, vector<1x2x32xf32>
    %339 = vector.shape_cast %338 : vector<1x2x32xf32> to vector<2x32xf32>
    %340 = vector.shape_cast %332 : vector<2x32xf32> to vector<1x2x32xf32>
    tpu.vector_store %arg12[%c1_61, %c0_62, %c0_63], %340 {strides = array<i32>} : memref<2x2x32xf32, #tpu.memory_space<vmem>>, vector<1x2x32xf32>,
    %341 = tpu.concatenate %201, %220, %239, %258, %277, %296, %315, %334 in 0 : vector<2x32xf32>, vector<2x32xf32>, vector<2x32xf32>, vector<2x32xf32>, vector<2x32xf32>, vector<2x32xf32>, vector<2x32xf32>, vector<2x32xf32> -> vector<16x32xf32>
    %c0_64 = arith.constant 0 : index
    %c0_65 = arith.constant 0 : index
    %342 = vector.load %arg8[%c0_64, %c0_65] : memref<32x16xf32, #tpu.memory_space<vmem>>, vector<32x16xf32>
    %cst_66 = arith.constant dense<0.000000e+00> : vector<16x16xf32>
    %343 = tpu.matmul %341, %342, %cst_66 {dimension_numbers = #tpu.dot_dimension_numbers<[1], [0], [0], [1], [0, 0, 1, 1], [], []>} : vector<16x32xf32>, vector<32x16xf32>, vector<16x16xf32> -> vector<16x16xf32>
    %c0_67 = arith.constant 0 : index
    %c0_68 = arith.constant 0 : index
    %344 = vector.load %arg9[%c0_67, %c0_68] : memref<1x16xf32, #tpu.memory_space<vmem>>, vector<1x16xf32>
    %345 = vector.broadcast %344 : vector<1x16xf32> to vector<16x16xf32>
    %346 = arith.addf %343, %345 : vector<16x16xf32>
    %c0_69 = arith.constant 0 : index
    %c0_70 = arith.constant 0 : index
    %347 = vector.load %arg10[%c0_69, %c0_70] : memref<16x16xf32, #tpu.memory_space<vmem>>, vector<16x16xf32>
    tpu.vector_store %arg10[%c0_69, %c0_70], %346 {strides = array<i32>} : memref<16x16xf32, #tpu.memory_space<vmem>>, vector<16x16xf32>,
    return
  }
}

</mosaic_0001>

<bundles_post_ra>
// kernel: lstm_model_forward.1
= control target key start
LH: loop header
LB: loop body
LE: loop exit
PB: predicated region body
PF: predicated region fallthrough
CT: control target
= control target key end

     0   :  { %18 = vsyncpa [#allocation3], 0  ;;  %s3465_s0 = inlined_call_operand.vmem [shape: s32[16,1], index: 0, kind: input, shape index: {}]   ;;  %s3466_s1 = inlined_call_operand.hbm [shape: f32[16,32], index: 1, kind: input, shape index: {}]   ;;  %s3467_s2 = inlined_call_operand.vmem [shape: f32[32,128], index: 2, kind: input, shape index: {}]   ;;  %s3468_s3 = inlined_call_operand.vmem [shape: f32[32,128], index: 3, kind: input, shape index: {}]   ;;  %s3469_s4 = inlined_call_operand.vmem [shape: f32[1,128], index: 4, kind: input, shape index: {}]   ;;  %s3470_s5 = inlined_call_operand.vmem [shape: f32[32,128], index: 5, kind: input, shape index: {}]   ;;  %s3471_s6 = inlined_call_operand.hbm [shape: f32[32,128], index: 6, kind: input, shape index: {}]   ;;  %s3472_s7 = inlined_call_operand.vmem [shape: f32[1,128], index: 7, kind: input, shape index: {}]   ;;  %s3473_s8 = inlined_call_operand.vmem [shape: f32[32,16], index: 8, kind: input, shape index: {}]   ;;  %s3474_s9 = inlined_call_operand.hbm [shape: f32[1,16], index: 9, kind: input, shape index: {}]   ;;  %s3475_s10 = inlined_call_operand.vmem [shape: f32[16,16], index: 10, kind: output, shape index: {0}]   ;;  %s3476_s11 = inlined_call_operand.hbm [shape: f32[2,2,32], index: 11, kind: output, shape index: {1}]   ;;  %s3477_s12 = inlined_call_operand.hbm [shape: f32[2,2,32], index: 12, kind: output, shape index: {2}]  }
   0x1   :  { %19 = vsyncpa [#allocation6], 0 }
   0x2   :  { %20 = vsyncpa [#allocation4], 0 }
   0x3   :  { %21 = vsyncpa [#allocation10], 0  ;;  %s2978_s21 = smov [#allocation5]   ;;  %s2979_s23 = smov [#allocation2]  }
   0x4   :  { %s49_s22 = sshll.u32 %s2978_s21, 4  ;;  %s29_s24 = sshll.u32 %s2979_s23, 4  ;;  %s50_s22 = int_to_ptr.vmem [resolvable:$true] %s49_s22  ;;  %s3058_s24 = int_to_ptr.vmem [resolvable:$true] %s29_s24 }
   0x5   :  { %s2860_s27 = scalar_lea.hbm %s3471_s6, 512 }
   0x6   :  { %p2861_p0 = scmp.ne.s32.totalorder %s3471_s6, %s2860_s27  ;;  %p2864_p1 = scmp.lt.u32.totalorder %s2860_s27, %s3471_s6 }
   0x8   :  { %p2866_p2 = pnand %p2864_p1, %p2861_p0 }
   0xa   :  { %2869 = shalt.err (!%p2866_p2)
}
   0xb   :  { %s2870_s14 = scalar_lea.vmem %s50_s22, 512  ;;  %p2875_p4 = scmp.lt.s32.totalorder %s50_s22, %s50_s22 }
   0xc   :  { %p2871_p3 = scmp.ne.s32.totalorder %s50_s22, %s2870_s14  ;;  %p2876_p5 = scmp.lt.s32.totalorder %s2870_s14, %s2870_s14 }
   0xe   :  { %p2877_p6 = por %p2876_p5, %p2875_p4 }
  0x10   :  { %p2878_p7 = pnand %p2877_p6, %p2871_p3 }
  0x12   :  { %2881 = shalt.err (!%p2878_p7)
}
  0x13   :  { %s2980_s15 = smov 128   ;;  %s2981_s16 = smov 8  }
  0x14   :  { %55 = dma.hbm_to_vmem [thread:$0]  %s3471_s6, 512, %s50_s22, [#allocation6], %s2980_s15, %s2980_s15, %s2981_s16  }
  0x15   :  { %s2882_s21 = scalar_lea.hbm %s3466_s1, 256 }
  0x16   :  { %p2883_p8 = scmp.ne.s32.totalorder %s3466_s1, %s2882_s21  ;;  %p2886_p9 = scmp.lt.u32.totalorder %s2882_s21, %s3466_s1 }
  0x18   :  { %p2888_p10 = pnand %p2886_p9, %p2883_p8 }
  0x1a   :  { %2891 = shalt.err (!%p2888_p10)
}
  0x1b   :  { %s2892_s28 = scalar_lea.vmem %s3058_s24, 256  ;;  %p2897_p12 = scmp.lt.s32.totalorder %s3058_s24, %s3058_s24 }
  0x1c   :  { %p2893_p11 = scmp.ne.s32.totalorder %s3058_s24, %s2892_s28  ;;  %p2898_p13 = scmp.lt.s32.totalorder %s2892_s28, %s2892_s28 }
  0x1e   :  { %p2899_p0 = por %p2898_p13, %p2897_p12 }
  0x20   :  { %p2900_p1 = pnand %p2899_p0, %p2893_p11 }
  0x22   :  { %2903 = shalt.err (!%p2900_p1)
}
  0x23   :  { %35 = dma.hbm_to_vmem [thread:$0]  %s3466_s1, 256, %s3058_s24, [#allocation3], %s2980_s15, %s2980_s15, %s2981_s16  }
  0x24   :  { %s2982_s29 = smov [#allocation7]   ;;  %s2904_s17 = scalar_lea.hbm %s3474_s9, 16 }
  0x25   :  { %s66_s30 = sshll.u32 %s2982_s29, 4  ;;  %p2905_p2 = scmp.ne.s32.totalorder %s3474_s9, %s2904_s17  ;;  %s67_s30 = int_to_ptr.vmem [resolvable:$true] %s66_s30 }
  0x26   :  { %p2908_p3 = scmp.lt.u32.totalorder %s2904_s17, %s3474_s9 }
  0x28   :  { %p2910_p4 = pnand %p2908_p3, %p2905_p2 }
  0x2a   :  { %2913 = shalt.err (!%p2910_p4)
}
  0x2b   :  { %s2914_s23 = scalar_lea.vmem %s67_s30, 16  ;;  %s2918_s1 = scalar_lea.vmem %s67_s30, 32 }
  0x2c   :  { %p2915_p5 = scmp.ne.s32.totalorder %s67_s30, %s2914_s23  ;;  %p2919_p6 = scmp.lt.s32.totalorder %s67_s30, %s67_s30 }
  0x2d   :  { %p2920_p7 = scmp.lt.s32.totalorder %s2918_s1, %s2914_s23 }
  0x2f   :  { %p2921_p8 = por %p2920_p7, %p2919_p6 }
  0x31   :  { %p2922_p9 = pnand %p2921_p8, %p2915_p5 }
  0x33   :  { %2925 = shalt.err (!%p2922_p9)
}
  0x34   :  { %69 = dma.hbm_to_vmem [thread:$0]  %s3474_s9, 16, %s67_s30, [#allocation6]  }
  0x35   :  { %2970 = dma.done.wait [#allocation3], 256  }
  0x36   :  { %2971 = vsyncadd [#allocation3], 4294967040 }
  0x37   :  { %2972 = dma.done.wait [#allocation6], 528  }
  0x38   :  { %2973 = vsyncadd [#allocation6], 4294966768  ;;  %v2983_v0 = vmov 0   ;;  %v79_v1 = vld [vmem:[%s3465_s0] sm:$0xff]  ;;  %v96_v3 = vld [vmem:[#allocation2 + $0x8] sm:$0xff]  ;;  %v2984_v9 = vmov 0.0|0.0   ;;  %v81_v13 = vlaneseq }
  0x39   :  { %2731 = vset.pattern.permute.xlu0 %v2983_v0  ;;  %v95_v2 = vld [vmem:[#allocation2] sm:$0xff]  ;;  %v80_v4 = vld [vmem:[%s3465_s0 + $0x8] sm:$0xff]  ;;  %v181_v10 = vld [vmem:[%s3467_s2 + $0x10] sm:$0xff]  ;;  %vm97_vm0 = vcmask 130048   ;;  %v2985_v18 = vmov 0.0   ;;  %vm2986_vm3 = vmmov 0  }
  0x3a   :  { %84 = vperm.xlu0 %2731, %v79_v1   ;;  %v2592_v5 = vpack.c.bf16 %v96_v3, %v95_v2  ;;  %v179_v6 = vld [vmem:[%s3467_s2] sm:$0xff]  ;;  %v180_v7 = vld [vmem:[%s3467_s2 + $0x8] sm:$0xff]  ;;  %v182_v11 = vld [vmem:[%s3467_s2 + $0x18] sm:$0xff]  ;;  %v82_v14 = vand.u32 127, %v81_v13  ;;  %vm194_vm4 = vcmask 261120   ;;  %s2987_s24 = smov 32  }
  0x3b   :  { %v2596_v8 = vpack.c.bf16 %v180_v7, %v179_v6  ;;  %v2600_v12 = vpack.c.bf16 %v182_v11, %v181_v10  ;;  %v183_v16 = vld [vmem:[%s3468_s3] sm:$0xff]  ;;  %v184_v17 = vld [vmem:[%s3468_s3 + $0x8] sm:$0xff]  ;;  %v185_v23 = vld [vmem:[%s3468_s3 + $0x10] sm:$0xff]  ;;  %vm1129_vm5 = vcmask 1041408   ;;  %vm1131_vm6 = vcmask 1043456   ;;  %s2989_s19 = smov 96  }
  0x3c   :  { %2593 = vmatprep.subr.bf16.mxu0 %v2592_v5  ;;  %v3129_v21 = vpack.c.bf16 %v184_v17, %v183_v16  ;;  %v186_v24 = vld [vmem:[%s3468_s3 + $0x18] sm:$0xff]  ;;  %v2235_v30 = vld [vmem:[%s3469_s4] ss:$0 sm:$0xff]  ;;  %s2988_s4 = smov 64   ;;  %vm1133_vm7 = vcmask 1045504   ;;  %vm1122_vm8 = vcmask 261126  }
  0x3d   :  { %2595 = vmatpush3.bf16.msra.mxu0 %v2592_v5  ;;  %2597 = vmatprep.subr.bf16.mxu1 %v2596_v8  ;;  %v3141_v25 = vpack.c.bf16 %v186_v24, %v185_v23  ;;  %s2991_s20 = smov [#allocation9]  }
  0x3e   :  { %87 = vperm.xlu0 %2731, %v80_v4   ;;  %2604 = vmatprep.subr.bf16.mxu0 %v2984_v9  ;;  %s2212_s21 = sshll.u32 %s2991_s20, 4  ;;  %s2213_s21 = int_to_ptr.vmem [resolvable:$true] %s2212_s21 }
  0x3f   :  { %2599 = vmatpush3.bf16.msra.mxu1 %v2596_v8 }
  0x40   :  { %2601 = vmatprep.subr.bf16.mxu1 %v2600_v12 }
  0x43   :  { %2603 = vmatpush3.bf16.msra.mxu1 %v2600_v12 }
  0x44   :  { %2610 = vmatprep.subr.bf16.mxu1 %v2984_v9 }
  0xb9   :  { %v85_v15 = vpop.permute.xlu0 %84 }
  0xba   :  { %vm89_vm1 = vcmp.eq.s32.totalorder %v85_v15, %v82_v14 }
  0xbb   :  { %v2231_v19 = vsel %vm89_vm1, 1.0, %v2985_v18 }
  0xbc   :  { %2380 = vmatprep.mubr.msk.f32.mxu0 %vm97_vm0, %v2231_v19 }
  0xbd   :  { %v88_v20 = vpop.permute.xlu0 %87 }
  0xbe   :  { %vm90_vm2 = vcmp.eq.s32.totalorder %v88_v20, %v82_v14 }
  0xbf   :  { %v2232_v22 = vsel %vm90_vm2, 1.0, %v2985_v18 }
  0xc0   :  { %2381 = vmatmul.mubr.msk.f32.vlgmr.msra.gmra.mrb[0].mxu0 %vm97_vm0, %v2232_v22 }
  0xc1   :  { %2606 = vmatpush3.bf16.msra.mxu0 %v3129_v21  ;;  %2402 = vmatprep.mubr.msk.f32.mxu0 %vm2986_vm3, %v2985_v18 }
  0xc2   :  { %2607 = vmatprep.subr.bf16.mxu0 %v2984_v9 }
  0xc5   :  { %2609 = vmatpush3.bf16.msra.mxu0 %v3141_v25 }
  0xc6   :  { %2616 = vmatprep.subr.bf16.mxu0 %v2984_v9 }
  0xc8   :  { %2403 = vmatmul.mubr.f32.vlgmr.msra.gmra.mrb[2].mxu0 %v2985_v18 }
  0xc9   :  { %2618 = vmatpush3.bf16.msra.mxu0 %v3129_v21  ;;  %2424 = vmatprep.mubr.msk.f32.mxu0 %vm2986_vm3, %v2985_v18 }
  0xca   :  { %2619 = vmatprep.subr.bf16.mxu0 %v2984_v9 }
  0xcd   :  { %2621 = vmatpush3.bf16.msra.mxu0 %v3141_v25 }
  0xce   :  { %2628 = vmatprep.subr.bf16.mxu0 %v2984_v9 }
 0x193   :  { %v2382_v26 = vpop.f32.mrb[0].mxu0 }
 0x194   :  { %v170_v27 = vpop.f32.mrb[1].mxu0 }
 0x195   :  { %2391 = vmatprep.mubr.msk.f32.mxu1 %vm194_vm4, %v170_v27 }
 0x196   :  { %2392 = vmatmul.mubr.msk.f32.vlgmr.msra.gmra.mrb[0].mxu1 %vm194_vm4, %v2382_v26 }
 0x197   :  { %2612 = vmatpush3.bf16.msra.mxu1 %v3129_v21  ;;  %2413 = vmatprep.mubr.msk.f32.mxu1 %vm2986_vm3, %v2985_v18 }
 0x198   :  { %2613 = vmatprep.subr.bf16.mxu1 %v2984_v9 }
 0x19b   :  { %2615 = vmatpush3.bf16.msra.mxu1 %v3141_v25  ;;  %v345_v28 = vpop.f32.mrb[2].mxu0 }
 0x19c   :  { %2622 = vmatprep.subr.bf16.mxu1 %v2984_v9  ;;  %v2404_v29 = vpop.f32.mrb[3].mxu0 }
 0x269   :  { %v2393_v31 = vpop.f32.mrb[0].mxu1 }
 0x26a   :  { %v3165_v32 = vadd.f32 %v2393_v31, %v2235_v30  ;;  %v267_v33 = vpop.f32.mrb[1].mxu1 }
 0x26b   :  { %v3167_v34 = vadd.f32 %v2235_v30, %v267_v33 }
 0x26d   :  { %v349_v35 = vadd.f32 %v345_v28, %v3167_v34 }
 0x26f   :  { %2732 = vtanh.f32 %v349_v35  ;;  %v2238_v37 = vmul.f32 -1.442695, %v349_v35 }
 0x271   :  { %2734 = vpow2.f32 %v2238_v37 }
 0x279   :  { %v2733_v36 = vpop.eup %2732 }
 0x27a   :  { %359 = vrot.lane.b32.xlu1 %v2733_v36, %s2987_s24 }
 0x27b   :  { %v2735_v38 = vpop.eup %2734 }
 0x27c   :  { %v353_v39 = vadd.f32 1.0, %v2735_v38 }
 0x27e   :  { %2736 = vrcp.f32 %v353_v39 }
 0x288   :  { %v2737_v40 = vpop.eup %2736 }
 0x289   :  { %v357_v43 = vmul.f32 0.0, %v2737_v40 }
 0x2ec   :  { %v360_v41 = vpop.permute.xlu1 %359 }
 0x2ed   :  { %v362_v42 = vmul.f32 %v2737_v40, %v360_v41 }
 0x2ef   :  { %364 = vrot.lane.b32.xlu1 %v362_v42, %s2987_s24 }
 0x361   :  { %v365_v44 = vpop.permute.xlu1 %364 }
 0x362   :  { %v367_v45 = vadd.f32 %v365_v44, %v357_v43 }
 0x364   :  { %2738 = vtanh.f32 %v367_v45  ;;  %v461_v61 = vrot.slane %v367_v45, 6 }
 0x36e   :  { %v2739_v46 = vpop.eup %2738 }
 0x36f   :  { %370 = vrot.lane.b32.xlu0 %v2739_v46, %s2987_s24 }
 0x3e1   :  { %v371_v47 = vpop.permute.xlu0 %370 }
 0x3e2   :  { %v3173_v48 = vmul.f32 %v2737_v40, %v371_v47 }
 0x3e4   :  { %375 = vrot.lane.b32.xlu1 %v3173_v48, %s2988_s4 }
 0x456   :  { %v376_v49 = vpop.permute.xlu1 %375 }
 0x457   :  { %2414 = vmatmul.mubr.msk.f32.vlgmr.msra.gmra.mrb[2].mxu1 %vm194_vm4, %v376_v49 }
 0x458   :  { %2624 = vmatpush3.bf16.msra.mxu1 %v3129_v21  ;;  %2435 = vmatprep.mubr.msk.f32.mxu1 %vm2986_vm3, %v2985_v18 }
 0x459   :  { %2625 = vmatprep.subr.bf16.mxu1 %v2984_v9 }
 0x45c   :  { %2627 = vmatpush3.bf16.msra.mxu1 %v3141_v25 }
 0x45d   :  { %2634 = vmatprep.subr.bf16.mxu1 %v2984_v9 }
 0x52a   :  { %v445_v50 = vpop.f32.mrb[2].mxu1 }
 0x52b   :  { %v450_v51 = vrot.slane %v445_v50, 6  ;;  %v2415_v52 = vpop.f32.mrb[3].mxu1 }
 0x52d   :  { %v452_v53 = vadd.f32 %v450_v51, %v3167_v34 }
 0x52f   :  { %2740 = vtanh.f32 %v452_v53  ;;  %v2240_v55 = vmul.f32 -1.442695, %v452_v53 }
 0x531   :  { %2742 = vpow2.f32 %v2240_v55 }
 0x539   :  { %v2741_v54 = vpop.eup %2740 }
 0x53a   :  { %465 = vrot.lane.b32.xlu0 %v2741_v54, %s2987_s24 }
 0x53b   :  { %v2743_v56 = vpop.eup %2742 }
 0x53c   :  { %v456_v57 = vadd.f32 1.0, %v2743_v56 }
 0x53e   :  { %2744 = vrcp.f32 %v456_v57 }
 0x548   :  { %v2745_v58 = vpop.eup %2744 }
 0x549   :  { %v463_v62 = vmul.f32 %v2745_v58, %v461_v61 }
 0x5ac   :  { %v466_v59 = vpop.permute.xlu0 %465 }
 0x5ad   :  { %v468_v60 = vmul.f32 %v2745_v58, %v466_v59 }
 0x5af   :  { %470 = vrot.lane.b32.xlu1 %v468_v60, %s2987_s24 }
 0x621   :  { %v471_v63 = vpop.permute.xlu1 %470 }
 0x622   :  { %v473_v0 = vadd.f32 %v471_v63, %v463_v62 }
 0x624   :  { %2746 = vtanh.f32 %v473_v0  ;;  %v568_v19 = vrot.slane %v473_v0, 6 }
 0x62e   :  { %v2747_v1 = vpop.eup %2746 }
 0x62f   :  { %476 = vrot.lane.b32.xlu0 %v2747_v1, %s2987_s24 }
 0x6a1   :  { %v477_v2 = vpop.permute.xlu0 %476 }
 0x6a2   :  { %v479_v3 = vmul.f32 %v2745_v58, %v477_v2 }
 0x6a4   :  { %v481_v4 = vrot.slane %v479_v3, 2  ;;  %v1130_v28 = vsel %vm1129_vm5, %v3173_v48, %v479_v3 }
 0x6a6   :  { %482 = vrot.lane.b32.xlu1 %v481_v4, %s2988_s4 }
 0x718   :  { %v483_v5 = vpop.permute.xlu1 %482 }
 0x719   :  { %2425 = vmatmul.mubr.msk.f32.vlgmr.msra.gmra.mrb[4].mxu0 %vm194_vm4, %v483_v5 }
 0x71a   :  { %2630 = vmatpush3.bf16.msra.mxu0 %v3129_v21  ;;  %2446 = vmatprep.mubr.msk.f32.mxu0 %vm2986_vm3, %v2985_v18 }
 0x71b   :  { %2631 = vmatprep.subr.bf16.mxu0 %v2984_v9 }
 0x71e   :  { %2633 = vmatpush3.bf16.msra.mxu0 %v3141_v25 }
 0x71f   :  { %2640 = vmatprep.subr.bf16.mxu0 %v2984_v9 }
 0x7ec   :  { %v552_v6 = vpop.f32.mrb[4].mxu0 }
 0x7ed   :  { %v557_v7 = vrot.slane %v552_v6, 4  ;;  %v2426_v8 = vpop.f32.mrb[5].mxu0 }
 0x7ef   :  { %v559_v10 = vadd.f32 %v557_v7, %v3167_v34 }
 0x7f1   :  { %2748 = vtanh.f32 %v559_v10  ;;  %v2242_v12 = vmul.f32 -1.442695, %v559_v10 }
 0x7f3   :  { %2750 = vpow2.f32 %v2242_v12 }
 0x7fb   :  { %v2749_v11 = vpop.eup %2748 }
 0x7fc   :  { %572 = vrot.lane.b32.xlu0 %v2749_v11, %s2987_s24 }
 0x7fd   :  { %v2751_v13 = vpop.eup %2750 }
 0x7fe   :  { %v563_v14 = vadd.f32 1.0, %v2751_v13 }
 0x800   :  { %2752 = vrcp.f32 %v563_v14 }
 0x80a   :  { %v2753_v15 = vpop.eup %2752 }
 0x80b   :  { %v570_v20 = vmul.f32 %v2753_v15, %v568_v19 }
 0x86e   :  { %v573_v16 = vpop.permute.xlu0 %572 }
 0x86f   :  { %v575_v17 = vmul.f32 %v2753_v15, %v573_v16 }
 0x871   :  { %577 = vrot.lane.b32.xlu1 %v575_v17, %s2987_s24 }
 0x8e3   :  { %v578_v22 = vpop.permute.xlu1 %577 }
 0x8e4   :  { %v580_v23 = vadd.f32 %v578_v22, %v570_v20 }
 0x8e6   :  { %2754 = vtanh.f32 %v580_v23  ;;  %v675_v45 = vrot.slane %v580_v23, 6 }
 0x8f0   :  { %v2755_v24 = vpop.eup %2754 }
 0x8f1   :  { %583 = vrot.lane.b32.xlu0 %v2755_v24, %s2987_s24 }
 0x963   :  { %v584_v26 = vpop.permute.xlu0 %583 }
 0x964   :  { %v586_v27 = vmul.f32 %v2753_v15, %v584_v26 }
 0x966   :  { %v588_v29 = vrot.slane %v586_v27, 4  ;;  %v1132_v30 = vsel %vm1131_vm6, %v1130_v28, %v586_v27 }
 0x968   :  { %589 = vrot.lane.b32.xlu1 %v588_v29, %s2988_s4 }
 0x9da   :  { %v590_v31 = vpop.permute.xlu1 %589 }
 0x9db   :  { %2436 = vmatmul.mubr.msk.f32.vlgmr.msra.gmra.mrb[4].mxu1 %vm194_vm4, %v590_v31 }
 0x9dc   :  { %2636 = vmatpush3.bf16.msra.mxu1 %v3129_v21  ;;  %2457 = vmatprep.mubr.msk.f32.mxu1 %vm2986_vm3, %v2985_v18 }
 0x9dd   :  { %2637 = vmatprep.subr.bf16.mxu1 %v2984_v9 }
 0x9e0   :  { %2639 = vmatpush3.bf16.msra.mxu1 %v3141_v25 }
 0x9e1   :  { %2646 = vmatprep.subr.bf16.mxu1 %v2984_v9 }
 0xaae   :  { %v659_v33 = vpop.f32.mrb[4].mxu1 }
 0xaaf   :  { %v664_v35 = vrot.slane %v659_v33, 2  ;;  %v2437_v36 = vpop.f32.mrb[5].mxu1 }
 0xab1   :  { %v666_v37 = vadd.f32 %v664_v35, %v3167_v34 }
 0xab3   :  { %2756 = vtanh.f32 %v666_v37  ;;  %v2244_v39 = vmul.f32 -1.442695, %v666_v37 }
 0xab5   :  { %2758 = vpow2.f32 %v2244_v39 }
 0xabd   :  { %v2757_v38 = vpop.eup %2756 }
 0xabe   :  { %679 = vrot.lane.b32.xlu0 %v2757_v38, %s2987_s24 }
 0xabf   :  { %v2759_v40 = vpop.eup %2758 }
 0xac0   :  { %v670_v41 = vadd.f32 1.0, %v2759_v40 }
 0xac2   :  { %2760 = vrcp.f32 %v670_v41 }
 0xacc   :  { %v2761_v42 = vpop.eup %2760 }
 0xacd   :  { %v677_v46 = vmul.f32 %v2761_v42, %v675_v45 }
 0xb30   :  { %v680_v43 = vpop.permute.xlu0 %679 }
 0xb31   :  { %v682_v44 = vmul.f32 %v2761_v42, %v680_v43 }
 0xb33   :  { %684 = vrot.lane.b32.xlu1 %v682_v44, %s2987_s24 }
 0xba5   :  { %v685_v47 = vpop.permute.xlu1 %684 }
 0xba6   :  { %v687_v48 = vadd.f32 %v685_v47, %v677_v46 }
 0xba8   :  { %2762 = vtanh.f32 %v687_v48  ;;  %v779_v0 = vrot.slane %v687_v48, 6 }
 0xbb2   :  { %v2763_v34 = vpop.eup %2762 }
 0xbb3   :  { %690 = vrot.lane.b32.xlu0 %v2763_v34, %s2987_s24 }
 0xc25   :  { %v691_v49 = vpop.permute.xlu0 %690 }
 0xc26   :  { %v693_v50 = vmul.f32 %v2761_v42, %v691_v49 }
 0xc28   :  { %v695_v51 = vrot.slane %v693_v50, 6  ;;  %v3216_v52 = vsel %vm1133_vm7, %v1132_v30, %v693_v50 }
 0xc2a   :  { %696 = vrot.lane.b32.xlu1 %v695_v51, %s2988_s4 }
 0xc9c   :  { %v697_v53 = vpop.permute.xlu1 %696 }
 0xc9d   :  { %2447 = vmatmul.mubr.msk.f32.vlgmr.msra.gmra.mrb[6].mxu0 %vm194_vm4, %v697_v53 }
 0xc9e   :  { %2642 = vmatpush3.bf16.msra.mxu0 %v3129_v21  ;;  %2468 = vmatprep.mubr.msk.f32.mxu0 %vm2986_vm3, %v2985_v18 }
 0xc9f   :  { %2643 = vmatprep.subr.bf16.mxu0 %v2984_v9 }
 0xca2   :  { %2645 = vmatpush3.bf16.msra.mxu0 %v3141_v25 }
 0xd70   :  { %v766_v54 = vpop.f32.mrb[6].mxu0 }
 0xd71   :  { %v770_v55 = vadd.f32 %v766_v54, %v3165_v32  ;;  %v2448_v56 = vpop.f32.mrb[7].mxu0 }
 0xd73   :  { %2764 = vtanh.f32 %v770_v55  ;;  %v2246_v58 = vmul.f32 -1.442695, %v770_v55 }
 0xd75   :  { %2766 = vpow2.f32 %v2246_v58 }
 0xd7d   :  { %v2765_v57 = vpop.eup %2764 }
 0xd7e   :  { %783 = vrot.lane.b32.xlu0 %v2765_v57, %s2987_s24 }
 0xd7f   :  { %v2767_v59 = vpop.eup %2766 }
 0xd80   :  { %v774_v60 = vadd.f32 1.0, %v2767_v59 }
 0xd82   :  { %2768 = vrcp.f32 %v774_v60 }
 0xd8c   :  { %v2769_v61 = vpop.eup %2768 }
 0xd8d   :  { %v781_v1 = vmul.f32 %v2769_v61, %v779_v0 }
 0xdf0   :  { %v784_v62 = vpop.permute.xlu0 %783 }
 0xdf1   :  { %v786_v63 = vmul.f32 %v2769_v61, %v784_v62 }
 0xdf3   :  { %788 = vrot.lane.b32.xlu1 %v786_v63, %s2987_s24 }
 0xe65   :  { %v789_v2 = vpop.permute.xlu1 %788 }
 0xe66   :  { %v791_v3 = vadd.f32 %v789_v2, %v781_v1 }
 0xe68   :  { %2770 = vtanh.f32 %v791_v3 }
 0xe72   :  { %v2771_v4 = vpop.eup %2770 }
 0xe73   :  { %794 = vrot.lane.b32.xlu0 %v2771_v4, %s2987_s24 }
 0xee5   :  { %v795_v5 = vpop.permute.xlu0 %794 }
 0xee6   :  { %v3229_v6 = vmul.f32 %v2769_v61, %v795_v5  ;;  %v1138_v5 = vld [vmem:[%s3470_s5] sm:$0xff] }
 0xee8   :  { %799 = vrot.lane.b32.xlu1 %v3229_v6, %s2988_s4 }
 0xf5a   :  { %v800_v7 = vpop.permute.xlu1 %799 }
 0xf5b   :  { %2458 = vmatmul.mubr.msk.f32.vlgmr.msra.gmra.mrb[6].mxu1 %vm194_vm4, %v800_v7  ;;  %v1142_v7 = vld [vmem:[#allocation5] sm:$0xff] }
 0xf5c   :  { %2648 = vmatpush3.bf16.msra.mxu1 %v3129_v21  ;;  %2479 = vmatprep.mubr.msk.f32.mxu1 %vm2986_vm3, %v2985_v18 }
 0xf5d   :  { %2649 = vmatprep.subr.bf16.mxu1 %v2984_v9 }
 0xf60   :  { %2651 = vmatpush3.bf16.msra.mxu1 %v3141_v25  ;;  %v885_v25 = vrot.slane %v791_v3, 6 }
 0xf61   :  { %2660 = vmatprep.subr.bf16.mxu1 %v2984_v9 }
0x102e   :  { %v869_v8 = vpop.f32.mrb[6].mxu1 }
0x102f   :  { %v874_v10 = vrot.slane %v869_v8, 6  ;;  %v2459_v11 = vpop.f32.mrb[7].mxu1  ;;  %v1143_v8 = vld [vmem:[#allocation5 + $0x8] sm:$0xff] }
0x1030   :  { %v1141_v11 = vld [vmem:[%s3470_s5 + $0x18] sm:$0xff] }
0x1031   :  { %v876_v12 = vadd.f32 %v874_v10, %v3165_v32  ;;  %v1140_v10 = vld [vmem:[%s3470_s5 + $0x10] sm:$0xff] }
0x1033   :  { %2772 = vtanh.f32 %v876_v12  ;;  %v2248_v14 = vmul.f32 -1.442695, %v876_v12  ;;  %v3278_v12 = vpack.c.bf16 %v1143_v8, %v1142_v7 }
0x1035   :  { %2774 = vpow2.f32 %v2248_v14  ;;  %v1144_v14 = vld [vmem:[#allocation5 + $0x10] sm:$0xff] }
0x103d   :  { %v2773_v13 = vpop.eup %2772 }
0x103e   :  { %889 = vrot.lane.b32.xlu0 %v2773_v13, %s2987_s24  ;;  %v2656_v13 = vpack.c.bf16 %v1141_v11, %v1140_v10 }
0x103f   :  { %v2775_v21 = vpop.eup %2774 }
0x1040   :  { %v880_v15 = vadd.f32 1.0, %v2775_v21  ;;  %v1145_v21 = vld [vmem:[#allocation5 + $0x18] sm:$0xff] }
0x1042   :  { %2776 = vrcp.f32 %v880_v15  ;;  %v3281_v15 = vpack.c.bf16 %v1145_v21, %v1144_v14 }
0x104c   :  { %v2777_v16 = vpop.eup %2776 }
0x104d   :  { %v887_v20 = vmul.f32 %v2777_v16, %v885_v25 }
0x10b0   :  { %v890_v17 = vpop.permute.xlu0 %889 }
0x10b1   :  { %v892_v19 = vmul.f32 %v2777_v16, %v890_v17 }
0x10b3   :  { %894 = vrot.lane.b32.xlu1 %v892_v19, %s2987_s24 }
0x1125   :  { %v895_v22 = vpop.permute.xlu1 %894 }
0x1126   :  { %v897_v23 = vadd.f32 %v895_v22, %v887_v20 }
0x1128   :  { %2778 = vtanh.f32 %v897_v23  ;;  %v992_v43 = vrot.slane %v897_v23, 6 }
0x1132   :  { %v2779_v24 = vpop.eup %2778 }
0x1133   :  { %900 = vrot.lane.b32.xlu0 %v2779_v24, %s2987_s24  ;;  %v2253_v24 = vld [vmem:[%s3472_s7] ss:$0 sm:$0xff] }
0x11a5   :  { %v901_v26 = vpop.permute.xlu0 %900 }
0x11a6   :  { %v903_v27 = vmul.f32 %v2777_v16, %v901_v26 }
0x11a8   :  { %v905_v28 = vrot.slane %v903_v27, 2  ;;  %v1135_v49 = vsel %vm1129_vm5, %v3229_v6, %v903_v27  ;;  %v1139_v6 = vld [vmem:[%s3470_s5 + $0x8] sm:$0xff] }
0x11aa   :  { %906 = vrot.lane.b32.xlu1 %v905_v28, %s2988_s4 }
0x121c   :  { %v907_v29 = vpop.permute.xlu1 %906 }
0x121d   :  { %2469 = vmatmul.mubr.msk.f32.vlgmr.msra.gmra.mrb[8].mxu0 %vm194_vm4, %v907_v29 }
0x12f0   :  { %v976_v30 = vpop.f32.mrb[8].mxu0 }
0x12f1   :  { %v981_v31 = vrot.slane %v976_v30, 4  ;;  %v2470_v33 = vpop.f32.mrb[9].mxu0 }
0x12f3   :  { %v983_v35 = vadd.f32 %v981_v31, %v3165_v32 }
0x12f5   :  { %2780 = vtanh.f32 %v983_v35  ;;  %v2250_v37 = vmul.f32 -1.442695, %v983_v35 }
0x12f7   :  { %2782 = vpow2.f32 %v2250_v37 }
0x12ff   :  { %v2781_v36 = vpop.eup %2780 }
0x1300   :  { %996 = vrot.lane.b32.xlu0 %v2781_v36, %s2987_s24 }
0x1301   :  { %v2783_v38 = vpop.eup %2782 }
0x1302   :  { %v987_v39 = vadd.f32 1.0, %v2783_v38 }
0x1304   :  { %2784 = vrcp.f32 %v987_v39 }
0x130e   :  { %v2785_v40 = vpop.eup %2784 }
0x130f   :  { %v994_v44 = vmul.f32 %v2785_v40, %v992_v43 }
0x1372   :  { %v997_v41 = vpop.permute.xlu0 %996 }
0x1373   :  { %v999_v42 = vmul.f32 %v2785_v40, %v997_v41 }
0x1375   :  { %1001 = vrot.lane.b32.xlu1 %v999_v42, %s2987_s24 }
0x13e7   :  { %v1002_v45 = vpop.permute.xlu1 %1001 }
0x13e8   :  { %v1004_v46 = vadd.f32 %v1002_v45, %v994_v44 }
0x13ea   :  { %2786 = vtanh.f32 %v1004_v46  ;;  %v1099_v1 = vrot.slane %v1004_v46, 6 }
0x13f4   :  { %v2787_v47 = vpop.eup %2786 }
0x13f5   :  { %1007 = vrot.lane.b32.xlu0 %v2787_v47, %s2987_s24 }
0x1467   :  { %v1008_v48 = vpop.permute.xlu0 %1007 }
0x1468   :  { %v1010_v34 = vmul.f32 %v2785_v40, %v1008_v48 }
0x146a   :  { %v1012_v50 = vrot.slane %v1010_v34, 4  ;;  %v1136_v51 = vsel %vm1131_vm6, %v1135_v49, %v1010_v34 }
0x146c   :  { %1013 = vrot.lane.b32.xlu1 %v1012_v50, %s2988_s4 }
0x14de   :  { %v1014_v53 = vpop.permute.xlu1 %1013 }
0x14df   :  { %2480 = vmatmul.mubr.msk.f32.vlgmr.msra.gmra.mrb[8].mxu1 %vm194_vm4, %v1014_v53 }
0x14e0   :  { %2501 = vmatprep.mubr.msk.f32.mxu1 %vm2986_vm3, %v2985_v18  ;;  %2662 = vmatpush3.bf16.msra.mxu1 %v3278_v12 }
0x14e1   :  { %2663 = vmatprep.subr.bf16.mxu1 %v2984_v9 }
0x14e4   :  { %2665 = vmatpush3.bf16.msra.mxu1 %v3281_v15 }
0x14e5   :  { %2672 = vmatprep.subr.bf16.mxu1 %v2984_v9 }
0x14e7   :  { %2502 = vmatmul.mubr.f32.vlgmr.msra.gmra.mrb[10].mxu1 %v2985_v18 }
0x14e8   :  { %2674 = vmatpush3.bf16.msra.mxu1 %v3278_v12  ;;  %2523 = vmatprep.mubr.msk.f32.mxu1 %vm2986_vm3, %v2985_v18 }
0x14e9   :  { %2675 = vmatprep.subr.bf16.mxu1 %v2984_v9 }
0x14ec   :  { %2677 = vmatpush3.bf16.msra.mxu1 %v3281_v15 }
0x14ed   :  { %2684 = vmatprep.subr.bf16.mxu1 %v2984_v9 }
0x15b2   :  { %v1083_v54 = vpop.f32.mrb[8].mxu1 }
0x15b3   :  { %v1088_v55 = vrot.slane %v1083_v54, 2  ;;  %v2481_v56 = vpop.f32.mrb[9].mxu1 }
0x15b5   :  { %v1090_v57 = vadd.f32 %v1088_v55, %v3165_v32 }
0x15b7   :  { %2788 = vtanh.f32 %v1090_v57  ;;  %v2252_v59 = vmul.f32 -1.442695, %v1090_v57 }
0x15b9   :  { %2790 = vpow2.f32 %v2252_v59 }
0x15ba   :  { %v1304_v22 = vpop.f32.mrb[10].mxu1 }
0x15bb   :  { %v2503_v23 = vpop.f32.mrb[11].mxu1 }
0x15c1   :  { %v2789_v58 = vpop.eup %2788 }
0x15c2   :  { %1103 = vrot.lane.b32.xlu0 %v2789_v58, %s2987_s24 }
0x15c3   :  { %v2791_v60 = vpop.eup %2790 }
0x15c4   :  { %v1094_v61 = vadd.f32 1.0, %v2791_v60 }
0x15c6   :  { %2792 = vrcp.f32 %v1094_v61 }
0x15d0   :  { %v2793_v62 = vpop.eup %2792 }
0x15d1   :  { %v1101_v2 = vmul.f32 %v2793_v62, %v1099_v1 }
0x1634   :  { %v1104_v63 = vpop.permute.xlu0 %1103 }
0x1635   :  { %v1106_v0 = vmul.f32 %v2793_v62, %v1104_v63 }
0x1637   :  { %1108 = vrot.lane.b32.xlu1 %v1106_v0, %s2987_s24 }
0x163b   :  { %1155 = vrot.lane.b32.xlu1 %v3216_v52, %s2988_s4  ;;  %v2652_v52 = vpack.c.bf16 %v1139_v6, %v1138_v5 }
0x163d   :  { %2653 = vmatprep.subr.bf16.mxu0 %v2652_v52 }
0x163e   :  { %2655 = vmatpush3.bf16.msra.mxu0 %v2652_v52 }
0x163f   :  { %2657 = vmatprep.subr.bf16.mxu0 %v2656_v13 }
0x1642   :  { %2659 = vmatpush3.bf16.msra.mxu0 %v2656_v13 }
0x1643   :  { %2666 = vmatprep.subr.bf16.mxu0 %v2984_v9 }
0x16a9   :  { %v1109_v32 = vpop.permute.xlu1 %1108 }
0x16aa   :  { %v3262_v3 = vadd.f32 %v1109_v32, %v1101_v2 }
0x16ac   :  { %2794 = vtanh.f32 %v3262_v3 }
0x16ad   :  { %v1156_v4 = vpop.permute.xlu1 %1155 }
0x16ae   :  { %2490 = vmatprep.mubr.msk.f32.mxu0 %vm194_vm4, %v1156_v4 }
0x16b6   :  { %v2795_v16 = vpop.eup %2794 }
0x16b7   :  { %1114 = vrot.lane.b32.xlu0 %v2795_v16, %s2987_s24 }
0x1729   :  { %v1115_v17 = vpop.permute.xlu0 %1114 }
0x172a   :  { %v3295_v19 = vmul.f32 %v2793_v62, %v1115_v17 }
0x172c   :  { %v1137_v25 = vsel %vm1133_vm7, %v1136_v51, %v3295_v19 }
0x172d   :  { %1157 = vrot.lane.b32.xlu0 %v1137_v25, %s2988_s4 }
0x179f   :  { %v1158_v20 = vpop.permute.xlu0 %1157 }
0x17a0   :  { %2491 = vmatmul.mubr.msk.f32.vlgmr.msra.gmra.mrb[10].mxu0 %vm194_vm4, %v1158_v20 }
0x17a1   :  { %2668 = vmatpush3.bf16.msra.mxu0 %v3278_v12  ;;  %2512 = vmatprep.mubr.msk.f32.mxu0 %vm2986_vm3, %v2985_v18 }
0x17a2   :  { %2669 = vmatprep.subr.bf16.mxu0 %v2984_v9 }
0x17a5   :  { %2671 = vmatpush3.bf16.msra.mxu0 %v3281_v15 }
0x17a6   :  { %2678 = vmatprep.subr.bf16.mxu0 %v2984_v9 }
0x1873   :  { %v2492_v26 = vpop.f32.mrb[10].mxu0 }
0x1874   :  { %v3310_v27 = vadd.f32 %v2492_v26, %v2253_v24  ;;  %v1229_v28 = vpop.f32.mrb[11].mxu0 }
0x1875   :  { %v3312_v29 = vadd.f32 %v2253_v24, %v1229_v28 }
0x1877   :  { %v1308_v30 = vadd.f32 %v1304_v22, %v3312_v29 }
0x1879   :  { %2796 = vtanh.f32 %v1308_v30  ;;  %v2256_v33 = vmul.f32 -1.442695, %v1308_v30 }
0x187b   :  { %2798 = vpow2.f32 %v2256_v33 }
0x1883   :  { %v2797_v31 = vpop.eup %2796 }
0x1884   :  { %1318 = vrot.lane.b32.xlu1 %v2797_v31, %s2987_s24 }
0x1885   :  { %v2799_v35 = vpop.eup %2798 }
0x1886   :  { %v1312_v36 = vadd.f32 1.0, %v2799_v35 }
0x1888   :  { %2800 = vrcp.f32 %v1312_v36 }
0x1892   :  { %v2801_v37 = vpop.eup %2800 }
0x1893   :  { %v1316_v40 = vmul.f32 0.0, %v2801_v37 }
0x18f6   :  { %v1319_v38 = vpop.permute.xlu1 %1318 }
0x18f7   :  { %v1321_v39 = vmul.f32 %v2801_v37, %v1319_v38 }
0x18f9   :  { %1323 = vrot.lane.b32.xlu0 %v1321_v39, %s2987_s24 }
0x196b   :  { %v1324_v41 = vpop.permute.xlu0 %1323 }
0x196c   :  { %v1326_v42 = vadd.f32 %v1324_v41, %v1316_v40 }
0x196e   :  { %2802 = vtanh.f32 %v1326_v42  ;;  %v1420_v58 = vrot.slane %v1326_v42, 6 }
0x1978   :  { %v2803_v43 = vpop.eup %2802 }
0x1979   :  { %1329 = vrot.lane.b32.xlu1 %v2803_v43, %s2987_s24 }
0x19eb   :  { %v1330_v44 = vpop.permute.xlu1 %1329 }
0x19ec   :  { %v3318_v45 = vmul.f32 %v2801_v37, %v1330_v44 }
0x19ee   :  { %1334 = vrot.lane.b32.xlu0 %v3318_v45, %s2988_s4 }
0x1a60   :  { %v1335_v46 = vpop.permute.xlu0 %1334 }
0x1a61   :  { %2513 = vmatmul.mubr.msk.f32.vlgmr.msra.gmra.mrb[12].mxu0 %vm194_vm4, %v1335_v46 }
0x1a62   :  { %2680 = vmatpush3.bf16.msra.mxu0 %v3278_v12  ;;  %2534 = vmatprep.mubr.msk.f32.mxu0 %vm2986_vm3, %v2985_v18 }
0x1a63   :  { %2681 = vmatprep.subr.bf16.mxu0 %v2984_v9 }
0x1a66   :  { %2683 = vmatpush3.bf16.msra.mxu0 %v3281_v15 }
0x1a67   :  { %2690 = vmatprep.subr.bf16.mxu0 %v2984_v9 }
0x1b34   :  { %v1404_v47 = vpop.f32.mrb[12].mxu0 }
0x1b35   :  { %v1409_v48 = vrot.slane %v1404_v47, 6  ;;  %v2514_v34 = vpop.f32.mrb[13].mxu0 }
0x1b37   :  { %v1411_v49 = vadd.f32 %v1409_v48, %v3312_v29 }
0x1b39   :  { %2804 = vtanh.f32 %v1411_v49  ;;  %v2258_v51 = vmul.f32 -1.442695, %v1411_v49 }
0x1b3b   :  { %2806 = vpow2.f32 %v2258_v51 }
0x1b43   :  { %v2805_v50 = vpop.eup %2804 }
0x1b44   :  { %1424 = vrot.lane.b32.xlu1 %v2805_v50, %s2987_s24 }
0x1b45   :  { %v2807_v53 = vpop.eup %2806 }
0x1b46   :  { %v1415_v54 = vadd.f32 1.0, %v2807_v53 }
0x1b48   :  { %2808 = vrcp.f32 %v1415_v54 }
0x1b52   :  { %v2809_v55 = vpop.eup %2808 }
0x1b53   :  { %v1422_v59 = vmul.f32 %v2809_v55, %v1420_v58 }
0x1bb6   :  { %v1425_v56 = vpop.permute.xlu1 %1424 }
0x1bb7   :  { %v1427_v57 = vmul.f32 %v2809_v55, %v1425_v56 }
0x1bb9   :  { %1429 = vrot.lane.b32.xlu0 %v1427_v57, %s2987_s24 }
0x1c2b   :  { %v1430_v60 = vpop.permute.xlu0 %1429 }
0x1c2c   :  { %v1432_v61 = vadd.f32 %v1430_v60, %v1422_v59 }
0x1c2e   :  { %2810 = vtanh.f32 %v1432_v61  ;;  %v1527_v21 = vrot.slane %v1432_v61, 6 }
0x1c38   :  { %v2811_v62 = vpop.eup %2810 }
0x1c39   :  { %1435 = vrot.lane.b32.xlu1 %v2811_v62, %s2987_s24 }
0x1cab   :  { %v1436_v63 = vpop.permute.xlu1 %1435 }
0x1cac   :  { %v1438_v0 = vmul.f32 %v2809_v55, %v1436_v63 }
0x1cae   :  { %v1440_v1 = vrot.slane %v1438_v0, 2  ;;  %v2089_v24 = vsel %vm1129_vm5, %v3318_v45, %v1438_v0 }
0x1cb0   :  { %1441 = vrot.lane.b32.xlu0 %v1440_v1, %s2988_s4 }
0x1d22   :  { %v1442_v2 = vpop.permute.xlu0 %1441 }
0x1d23   :  { %2524 = vmatmul.mubr.msk.f32.vlgmr.msra.gmra.mrb[12].mxu1 %vm194_vm4, %v1442_v2 }
0x1d24   :  { %2686 = vmatpush3.bf16.msra.mxu1 %v3278_v12  ;;  %2545 = vmatprep.mubr.msk.f32.mxu1 %vm2986_vm3, %v2985_v18 }
0x1d25   :  { %2687 = vmatprep.subr.bf16.mxu1 %v2984_v9 }
0x1d28   :  { %2689 = vmatpush3.bf16.msra.mxu1 %v3281_v15 }
0x1d29   :  { %2696 = vmatprep.subr.bf16.mxu1 %v2984_v9 }
0x1df6   :  { %v1511_v32 = vpop.f32.mrb[12].mxu1 }
0x1df7   :  { %v1516_v4 = vrot.slane %v1511_v32, 4  ;;  %v2525_v5 = vpop.f32.mrb[13].mxu1 }
0x1df9   :  { %v1518_v6 = vadd.f32 %v1516_v4, %v3312_v29 }
0x1dfb   :  { %2812 = vtanh.f32 %v1518_v6  ;;  %v2260_v52 = vmul.f32 -1.442695, %v1518_v6 }
0x1dfd   :  { %2814 = vpow2.f32 %v2260_v52 }
0x1e05   :  { %v2813_v7 = vpop.eup %2812 }
0x1e06   :  { %1531 = vrot.lane.b32.xlu1 %v2813_v7, %s2987_s24 }
0x1e07   :  { %v2815_v8 = vpop.eup %2814 }
0x1e08   :  { %v1522_v10 = vadd.f32 1.0, %v2815_v8 }
0x1e0a   :  { %2816 = vrcp.f32 %v1522_v10 }
0x1e14   :  { %v2817_v11 = vpop.eup %2816 }
0x1e15   :  { %v1529_v16 = vmul.f32 %v2817_v11, %v1527_v21 }
0x1e78   :  { %v1532_v13 = vpop.permute.xlu1 %1531 }
0x1e79   :  { %v1534_v14 = vmul.f32 %v2817_v11, %v1532_v13 }
0x1e7b   :  { %1536 = vrot.lane.b32.xlu0 %v1534_v14, %s2987_s24 }
0x1eed   :  { %v1537_v17 = vpop.permute.xlu0 %1536 }
0x1eee   :  { %v1539_v25 = vadd.f32 %v1537_v17, %v1529_v16 }
0x1ef0   :  { %2818 = vtanh.f32 %v1539_v25  ;;  %v1634_v44 = vrot.slane %v1539_v25, 6 }
0x1efa   :  { %v2819_v20 = vpop.eup %2818 }
0x1efb   :  { %1542 = vrot.lane.b32.xlu1 %v2819_v20, %s2987_s24 }
0x1f6d   :  { %v1543_v22 = vpop.permute.xlu1 %1542 }
0x1f6e   :  { %v1545_v23 = vmul.f32 %v2817_v11, %v1543_v22 }
0x1f70   :  { %v1547_v26 = vrot.slane %v1545_v23, 4  ;;  %v2090_v28 = vsel %vm1131_vm6, %v2089_v24, %v1545_v23 }
0x1f72   :  { %1548 = vrot.lane.b32.xlu0 %v1547_v26, %s2988_s4 }
0x1fe4   :  { %v1549_v30 = vpop.permute.xlu0 %1548 }
0x1fe5   :  { %2535 = vmatmul.mubr.msk.f32.vlgmr.msra.gmra.mrb[14].mxu0 %vm194_vm4, %v1549_v30 }
0x1fe6   :  { %2692 = vmatpush3.bf16.msra.mxu0 %v3278_v12  ;;  %2556 = vmatprep.mubr.msk.f32.mxu0 %vm2986_vm3, %v2985_v18 }
0x1fe7   :  { %2693 = vmatprep.subr.bf16.mxu0 %v2984_v9 }
0x1fea   :  { %2695 = vmatpush3.bf16.msra.mxu0 %v3281_v15 }
0x1feb   :  { %2702 = vmatprep.subr.bf16.mxu0 %v2984_v9 }
0x20b8   :  { %v1618_v31 = vpop.f32.mrb[14].mxu0 }
0x20b9   :  { %v1623_v33 = vrot.slane %v1618_v31, 2  ;;  %v2536_v35 = vpop.f32.mrb[15].mxu0 }
0x20bb   :  { %v1625_v36 = vadd.f32 %v1623_v33, %v3312_v29 }
0x20bd   :  { %2820 = vtanh.f32 %v1625_v36  ;;  %v2262_v38 = vmul.f32 -1.442695, %v1625_v36 }
0x20bf   :  { %2822 = vpow2.f32 %v2262_v38 }
0x20c7   :  { %v2821_v37 = vpop.eup %2820 }
0x20c8   :  { %1638 = vrot.lane.b32.xlu1 %v2821_v37, %s2987_s24 }
0x20c9   :  { %v2823_v39 = vpop.eup %2822 }
0x20ca   :  { %v1629_v40 = vadd.f32 1.0, %v2823_v39 }
0x20cc   :  { %2824 = vrcp.f32 %v1629_v40 }
0x20d6   :  { %v2825_v41 = vpop.eup %2824 }
0x20d7   :  { %v1636_v45 = vmul.f32 %v2825_v41, %v1634_v44 }
0x213a   :  { %v1639_v42 = vpop.permute.xlu1 %1638 }
0x213b   :  { %v1641_v43 = vmul.f32 %v2825_v41, %v1639_v42 }
0x213d   :  { %1643 = vrot.lane.b32.xlu0 %v1641_v43, %s2987_s24 }
0x21af   :  { %v1644_v46 = vpop.permute.xlu0 %1643 }
0x21b0   :  { %v1646_v47 = vadd.f32 %v1644_v46, %v1636_v45 }
0x21b2   :  { %2826 = vtanh.f32 %v1646_v47  ;;  %v1738_v63 = vrot.slane %v1646_v47, 6 }
0x21bc   :  { %v2827_v29 = vpop.eup %2826 }
0x21bd   :  { %1649 = vrot.lane.b32.xlu1 %v2827_v29, %s2987_s24 }
0x222f   :  { %v1650_v48 = vpop.permute.xlu1 %1649 }
0x2230   :  { %v1652_v34 = vmul.f32 %v2825_v41, %v1650_v48 }
0x2232   :  { %v1654_v49 = vrot.slane %v1652_v34, 6  ;;  %v3361_v50 = vsel %vm1133_vm7, %v2090_v28, %v1652_v34 }
0x2234   :  { %1655 = vrot.lane.b32.xlu0 %v1654_v49, %s2988_s4 }
0x22a6   :  { %v1656_v51 = vpop.permute.xlu0 %1655 }
0x22a7   :  { %2546 = vmatmul.mubr.msk.f32.vlgmr.msra.gmra.mrb[14].mxu1 %vm194_vm4, %v1656_v51 }
0x22a8   :  { %2698 = vmatpush3.bf16.msra.mxu1 %v3278_v12  ;;  %2567 = vmatprep.mubr.msk.f32.mxu1 %vm2986_vm3, %v2985_v18 }
0x22a9   :  { %2699 = vmatprep.subr.bf16.mxu1 %v2984_v9 }
0x22ac   :  { %2701 = vmatpush3.bf16.msra.mxu1 %v3281_v15 }
0x237a   :  { %v1725_v53 = vpop.f32.mrb[14].mxu1 }
0x237b   :  { %v1729_v54 = vadd.f32 %v1725_v53, %v3310_v27  ;;  %v2547_v55 = vpop.f32.mrb[15].mxu1 }
0x237d   :  { %2828 = vtanh.f32 %v1729_v54  ;;  %v2264_v57 = vmul.f32 -1.442695, %v1729_v54 }
0x237f   :  { %2830 = vpow2.f32 %v2264_v57 }
0x2387   :  { %v2829_v56 = vpop.eup %2828 }
0x2388   :  { %1742 = vrot.lane.b32.xlu1 %v2829_v56, %s2987_s24 }
0x2389   :  { %v2831_v58 = vpop.eup %2830 }
0x238a   :  { %v1733_v59 = vadd.f32 1.0, %v2831_v58 }
0x238c   :  { %2832 = vrcp.f32 %v1733_v59 }
0x2396   :  { %v2833_v60 = vpop.eup %2832 }
0x2397   :  { %v1740_v0 = vmul.f32 %v2833_v60, %v1738_v63 }
0x23fa   :  { %v1743_v61 = vpop.permute.xlu1 %1742 }
0x23fb   :  { %v1745_v62 = vmul.f32 %v2833_v60, %v1743_v61 }
0x23fd   :  { %1747 = vrot.lane.b32.xlu0 %v1745_v62, %s2987_s24 }
0x246f   :  { %v1748_v1 = vpop.permute.xlu0 %1747 }
0x2470   :  { %v1750_v2 = vadd.f32 %v1748_v1, %v1740_v0 }
0x2472   :  { %2834 = vtanh.f32 %v1750_v2 }
0x247c   :  { %v2835_v32 = vpop.eup %2834 }
0x247d   :  { %1753 = vrot.lane.b32.xlu1 %v2835_v32, %s2987_s24 }
0x24ef   :  { %v1754_v4 = vpop.permute.xlu1 %1753 }
0x24f0   :  { %v3374_v5 = vmul.f32 %v2833_v60, %v1754_v4 }
0x24f2   :  { %1758 = vrot.lane.b32.xlu0 %v3374_v5, %s2988_s4 }
0x2564   :  { %v1759_v6 = vpop.permute.xlu0 %1758 }
0x2565   :  { %2557 = vmatmul.mubr.msk.f32.vlgmr.msra.gmra.mrb[16].mxu0 %vm194_vm4, %v1759_v6 }
0x2566   :  { %2704 = vmatpush3.bf16.msra.mxu0 %v3278_v12  ;;  %2578 = vmatprep.mubr.msk.f32.mxu0 %vm2986_vm3, %v2985_v18 }
0x2567   :  { %2705 = vmatprep.subr.bf16.mxu0 %v2984_v9  ;;  %v1844_v9 = vrot.slane %v1750_v2, 6 }
0x256a   :  { %2707 = vmatpush3.bf16.msra.mxu0 %v3281_v15 }
0x2638   :  { %v1828_v7 = vpop.f32.mrb[16].mxu0 }
0x2639   :  { %v1833_v52 = vrot.slane %v1828_v7, 6  ;;  %v2558_v8 = vpop.f32.mrb[17].mxu0 }
0x263b   :  { %v1835_v10 = vadd.f32 %v1833_v52, %v3310_v27  ;;  %v2098_v52 = vld [vmem:[%s3473_s8 + $0x18] sm:$0xff] }
0x263d   :  { %2836 = vtanh.f32 %v1835_v10  ;;  %v2266_v13 = vmul.f32 -1.442695, %v1835_v10 }
0x263f   :  { %2838 = vpow2.f32 %v2266_v13 }
0x2647   :  { %v2837_v11 = vpop.eup %2836 }
0x2648   :  { %1848 = vrot.lane.b32.xlu1 %v2837_v11, %s2987_s24 }
0x2649   :  { %v2839_v14 = vpop.eup %2838 }
0x264a   :  { %v1839_v12 = vadd.f32 1.0, %v2839_v14 }
0x264c   :  { %2840 = vrcp.f32 %v1839_v12 }
0x2656   :  { %v2841_v21 = vpop.eup %2840 }
0x2657   :  { %v1846_v15 = vmul.f32 %v2841_v21, %v1844_v9 }
0x26ba   :  { %v1849_v18 = vpop.permute.xlu1 %1848 }
0x26bb   :  { %v1851_v16 = vmul.f32 %v2841_v21, %v1849_v18 }
0x26bd   :  { %1853 = vrot.lane.b32.xlu0 %v1851_v16, %s2987_s24 }
0x272f   :  { %v1854_v17 = vpop.permute.xlu0 %1853 }
0x2730   :  { %v1856_v25 = vadd.f32 %v1854_v17, %v1846_v15 }
0x2732   :  { %2842 = vtanh.f32 %v1856_v25  ;;  %v1951_v42 = vrot.slane %v1856_v25, 6 }
0x273c   :  { %v2843_v20 = vpop.eup %2842 }
0x273d   :  { %1859 = vrot.lane.b32.xlu1 %v2843_v20, %s2987_s24 }
0x27af   :  { %v1860_v22 = vpop.permute.xlu1 %1859 }
0x27b0   :  { %v1862_v23 = vmul.f32 %v2841_v21, %v1860_v22 }
0x27b2   :  { %v1864_v24 = vrot.slane %v1862_v23, 2  ;;  %v2092_v48 = vsel %vm1129_vm5, %v3374_v5, %v1862_v23  ;;  %v2095_v5 = vld [vmem:[%s3473_s8] sm:$0xff] }
0x27b4   :  { %1865 = vrot.lane.b32.xlu0 %v1864_v24, %s2988_s4 }
0x2826   :  { %v1866_v26 = vpop.permute.xlu0 %1865 }
0x2827   :  { %2568 = vmatmul.mubr.msk.f32.vlgmr.msra.gmra.mrb[16].mxu1 %vm194_vm4, %v1866_v26 }
0x28fa   :  { %v1935_v28 = vpop.f32.mrb[16].mxu1 }
0x28fb   :  { %v1940_v30 = vrot.slane %v1935_v28, 4  ;;  %v2569_v31 = vpop.f32.mrb[17].mxu1 }
0x28fd   :  { %v1942_v33 = vadd.f32 %v1940_v30, %v3310_v27 }
0x28ff   :  { %2844 = vtanh.f32 %v1942_v33  ;;  %v2268_v36 = vmul.f32 -1.442695, %v1942_v33 }
0x2901   :  { %2846 = vpow2.f32 %v2268_v36 }
0x2909   :  { %v2845_v35 = vpop.eup %2844 }
0x290a   :  { %1955 = vrot.lane.b32.xlu1 %v2845_v35, %s2987_s24 }
0x290b   :  { %v2847_v37 = vpop.eup %2846 }
0x290c   :  { %v1946_v38 = vadd.f32 1.0, %v2847_v37 }
0x290e   :  { %2848 = vrcp.f32 %v1946_v38 }
0x2918   :  { %v2849_v39 = vpop.eup %2848 }
0x2919   :  { %v1953_v43 = vmul.f32 %v2849_v39, %v1951_v42 }
0x297c   :  { %v1956_v40 = vpop.permute.xlu1 %1955 }
0x297d   :  { %v1958_v41 = vmul.f32 %v2849_v39, %v1956_v40 }
0x297f   :  { %1960 = vrot.lane.b32.xlu0 %v1958_v41, %s2987_s24 }
0x29f1   :  { %v1961_v44 = vpop.permute.xlu0 %1960 }
0x29f2   :  { %v1963_v45 = vadd.f32 %v1961_v44, %v1953_v43 }
0x29f4   :  { %2850 = vtanh.f32 %v1963_v45 }
0x29fe   :  { %v2851_v46 = vpop.eup %2850 }
0x29ff   :  { %1966 = vrot.lane.b32.xlu1 %v2851_v46, %s2987_s24 }
0x2a71   :  { %v1967_v47 = vpop.permute.xlu1 %1966 }
0x2a72   :  { %v1969_v29 = vmul.f32 %v2849_v39, %v1967_v47 }
0x2a74   :  { %v1971_v34 = vrot.slane %v1969_v29, 4  ;;  %v2093_v49 = vsel %vm1131_vm6, %v2092_v48, %v1969_v29 }
0x2a76   :  { %1972 = vrot.lane.b32.xlu0 %v1971_v34, %s2988_s4 }
0x2ae8   :  { %v1973_v51 = vpop.permute.xlu0 %1972 }
0x2ae9   :  { %2579 = vmatmul.mubr.msk.f32.vlgmr.msra.gmra.mrb[18].mxu0 %vm194_vm4, %v1973_v51 }
0x2bbc   :  { %v2042_v53 = vpop.f32.mrb[18].mxu0 }
0x2bbd   :  { %v2047_v54 = vrot.slane %v2042_v53, 2  ;;  %v2580_v55 = vpop.f32.mrb[19].mxu0 }
0x2bbf   :  { %v2049_v56 = vadd.f32 %v2047_v54, %v3310_v27  ;;  %v2058_v27 = vrot.slane %v1963_v45, 6 }
0x2bc1   :  { %2852 = vtanh.f32 %v2049_v56  ;;  %v2270_v58 = vmul.f32 -1.442695, %v2049_v56 }
0x2bc3   :  { %2854 = vpow2.f32 %v2270_v58 }
0x2bcb   :  { %v2853_v57 = vpop.eup %2852 }
0x2bcc   :  { %2062 = vrot.lane.b32.xlu1 %v2853_v57, %s2987_s24 }
0x2bcd   :  { %v2855_v59 = vpop.eup %2854 }
0x2bce   :  { %v2053_v60 = vadd.f32 1.0, %v2855_v59 }
0x2bd0   :  { %2856 = vrcp.f32 %v2053_v60 }
0x2bda   :  { %v2857_v61 = vpop.eup %2856 }
0x2bdb   :  { %v2060_v0 = vmul.f32 %v2857_v61, %v2058_v27 }
0x2c3e   :  { %v2063_v62 = vpop.permute.xlu1 %2062 }
0x2c3f   :  { %v2065_v63 = vmul.f32 %v2857_v61, %v2063_v62 }
0x2c41   :  { %2067 = vrot.lane.b32.xlu0 %v2065_v63, %s2987_s24 }
0x2c45   :  { %2108 = vrot.lane.b32.xlu0 %v3361_v50, %s2988_s4  ;;  %v2097_v50 = vld [vmem:[%s3473_s8 + $0x10] sm:$0xff] }
0x2c46   :  { %v2712_v8 = vpack.c.bf16 %v2098_v52, %v2097_v50 }
0x2c49   :  { %1119 = vrot.lane.b32.xlu0 %v3295_v19, %s2988_s4  ;;  %v2096_v19 = vld [vmem:[%s3473_s8 + $0x8] sm:$0xff]  ;;  %s2990_s8 = smov [#allocation8]  }
0x2c4a   :  { %v2708_v7 = vpack.c.bf16 %v2096_v19, %v2095_v5  ;;  %s2200_s2 = sshll.u32 %s2990_s8, 4  ;;  %s2201_s2 = int_to_ptr.vmem [resolvable:$true] %s2200_s2 }
0x2c4b   :  { %s2926_s23 = scalar_lea.vmem %s2201_s2, 64  ;;  %p2931_p11 = scmp.lt.s32.totalorder %s2201_s2, %s2201_s2 }
0x2c4c   :  { %2709 = vmatprep.subr.bf16.mxu1 %v2708_v7  ;;  %p2927_p10 = scmp.ne.s32.totalorder %s2201_s2, %s2926_s23  ;;  %p2932_p12 = scmp.lt.s32.totalorder %s2926_s23, %s2926_s23 }
0x2c4d   :  { %2711 = vmatpush3.bf16.msra.mxu1 %v2708_v7 }
0x2c4e   :  { %2713 = vmatprep.subr.bf16.mxu1 %v2712_v8  ;;  %p2933_p13 = por %p2932_p12, %p2931_p11 }
0x2c50   :  { %p2934_p0 = pnand %p2933_p13, %p2927_p10 }
0x2c51   :  { %2715 = vmatpush3.bf16.msra.mxu1 %v2712_v8 }
0x2cb3   :  { %v2068_v1 = vpop.permute.xlu0 %2067 }
0x2cb4   :  { %v2070_v2 = vadd.f32 %v2068_v1, %v2060_v0 }
0x2cb6   :  { %2858 = vtanh.f32 %v2070_v2 }
0x2cb7   :  { %v2109_v32 = vpop.permute.xlu0 %2108 }
0x2cb8   :  { %2589 = vmatprep.mubr.msk.f32.mxu1 %vm194_vm4, %v2109_v32 }
0x2cbb   :  { %v1120_v4 = vpop.permute.xlu0 %1119 }
0x2cbc   :  { %1123 = vst.msk [vmem:[#allocation8 - $0x6] sm:$0xc0] %vm1122_vm8, %v1120_v4 }
0x2cc0   :  { %v2859_v6 = vpop.eup %2858 }
0x2cc1   :  { %2073 = vrot.lane.b32.xlu1 %v2859_v6, %s2987_s24 }
0x2d33   :  { %v2074_v10 = vpop.permute.xlu1 %2073 }
0x2d34   :  { %v2076_v11 = vmul.f32 %v2857_v61, %v2074_v10 }
0x2d36   :  { %2078 = vrot.lane.b32.xlu0 %v2076_v11, %s2988_s4  ;;  %v2094_v13 = vsel %vm1133_vm7, %v2093_v49, %v2076_v11 }
0x2d37   :  { %2110 = vrot.lane.b32.xlu1 %v2094_v13, %s2988_s4 }
0x2d3b   :  { %1125 = vrot.lane.b32.xlu1 %v3262_v3, %s2989_s19 }
0x2d3f   :  { %2084 = vrot.lane.b32.xlu1 %v2070_v2, %s2989_s19 }
0x2da8   :  { %v2079_v14 = vpop.permute.xlu0 %2078 }
0x2da9   :  { %2082 = vst.msk [vmem:[#allocation8 - $0x4] sm:$0xc0] %vm1122_vm8, %v2079_v14  ;;  %v2111_v12 = vpop.permute.xlu1 %2110 }
0x2daa   :  { %2590 = vmatmul.mubr.msk.f32.vlgmr.msra.gmra.mrb[18].mxu1 %vm194_vm4, %v2111_v12 }
0x2dad   :  { %v1126_v21 = vpop.permute.xlu1 %1125 }
0x2dae   :  { %1128 = vst.msk [vmem:[#allocation9 - $0x6] sm:$0xc0] %vm1122_vm8, %v1126_v21 }
0x2db1   :  { %v2085_v18 = vpop.permute.xlu1 %2084 }
0x2db2   :  { %2088 = vst.msk [vmem:[#allocation9 - $0x4] sm:$0xc0] %vm1122_vm8, %v2085_v18 }
0x2db3   :  { %2937 = shalt.err (!%p2934_p0)
}
0x2db4   :  { %s2938_s4 = scalar_lea.hbm %s3476_s11, 64 }
0x2db5   :  { %p2939_p1 = scmp.ne.s32.totalorder %s3476_s11, %s2938_s4  ;;  %p2942_p2 = scmp.lt.u32.totalorder %s2938_s4, %s3476_s11 }
0x2db7   :  { %p2944_p3 = pnand %p2942_p2, %p2939_p1 }
0x2db9   :  { %2947 = shalt.err (!%p2944_p3)
}
0x2dba   :  { %s2992_s27 = smov 2   ;;  %s2948_s6 = scalar_lea.vmem %s2213_s21, 64 }
0x2dbb   :  { %2206 = dma.vmem_to_hbm [thread:$0]  %s2201_s2, 64, %s3476_s11, [#allocation4], %s2987_s24, %s2987_s24, %s2992_s27  }
0x2dbc   :  { %p2949_p4 = scmp.ne.s32.totalorder %s2213_s21, %s2948_s6  ;;  %p2953_p5 = scmp.lt.s32.totalorder %s2213_s21, %s2213_s21 }
0x2dbd   :  { %p2954_p6 = scmp.lt.s32.totalorder %s2948_s6, %s2948_s6 }
0x2dbf   :  { %p2955_p7 = por %p2954_p6, %p2953_p5 }
0x2dc1   :  { %p2956_p8 = pnand %p2955_p7, %p2949_p4 }
0x2dc3   :  { %2959 = shalt.err (!%p2956_p8)
}
0x2dc4   :  { %s2960_s7 = scalar_lea.hbm %s3477_s12, 64 }
0x2dc5   :  { %p2961_p9 = scmp.ne.s32.totalorder %s3477_s12, %s2960_s7  ;;  %p2964_p10 = scmp.lt.u32.totalorder %s2960_s7, %s3477_s12 }
0x2dc7   :  { %p2966_p11 = pnand %p2964_p10, %p2961_p9 }
0x2dc9   :  { %2969 = shalt.err (!%p2966_p11)
}
0x2dca   :  { %2218 = dma.vmem_to_hbm [thread:$0]  %s2213_s21, 64, %s3477_s12, [#allocation10], %s2987_s24, %s2987_s24, %s2992_s27   ;;  %v2271_v3 = vld [vmem:[#allocation7] ss:$0 sm:$0xff] }
0x2e7d   :  { %v2591_v16 = vpop.f32.mrb[18].mxu1 }
0x2e7e   :  { %v2188_v9 = vadd.f32 %v2591_v16, %v2271_v3  ;;  %v2182_v15 = vpop.f32.mrb[19].mxu1 }
0x2e7f   :  { %v2183_v17 = vadd.f32 %v2271_v3, %v2182_v15 }
0x2e80   :  { %2192 = vst.msk [vmem:[%s3475_s10 + $0x8] sm:$0xff] %vm97_vm0, %v2188_v9 }
0x2e81   :  { %2191 = vst.msk [vmem:[%s3475_s10] sm:$0xff] %vm97_vm0, %v2183_v17 }
0x2e82   :  { %2974 = dma.done.wait [#allocation4], 64  }
0x2e83   :  { %2975 = vsyncadd [#allocation4], 4294967232 }
0x2e84   :  { %2976 = dma.done.wait [#allocation10], 64  }
0x2e85   :  { %2977 = vsyncadd [#allocation10], 4294967232 }
0x2e86   :  { %2227 = vsyncpa [#allocation3], 1 }
0x2e87   :  { %2228 = vsyncpa [#allocation6], 1 }
0x2e88   :  { %2229 = vsyncpa [#allocation4], 1 }
0x2e89   :  { %2230 = vsyncpa [#allocation10], 1 }

</bundles_post_ra>
